<compile_context>
chip_gen: v7x
topology: tpu7x:2x2x1
jax: 0.10.0
libtpu: 0.0.40
codegen_flags: <defaults>
</compile_context>

<pallas_src>
import functools

import jax
import jax.numpy as jnp
from jax.experimental import pallas as pl
from jax.experimental.pallas import tpu as pltpu

SQRT3 = 3.0 ** 0.5
SQRT5 = 5.0 ** 0.5
SQRT15 = SQRT3 * SQRT5
_NORM_EPS = 1e-12  # torch.nn.functional.normalize eps

N_EDGE_SH = 9       # lmax=2 -> 0e + 1o + 2e
N_FIELD_SH = 4      # lmax=1 -> 0e + 1o
N_OUT = N_EDGE_SH + N_FIELD_SH  # 13
_LANES = 128


def _round_up(a: int, b: int) -> int:
    return ((a + b - 1) // b) * b


def _write_edge_sh(ev_ref, out_ref):
    """Edge SH (lmax=2, normalize=True, 'component') -> out rows 0..8; row 9 = 1."""
    x = ev_ref[0]
    y = ev_ref[1]
    z = ev_ref[2]

    # torch.nn.functional.normalize(edge_vec, dim=-1) with eps=1e-12:
    #   v / max(|v|, eps) == v * rsqrt(max(|v|^2, eps^2)).
    # Padded (all-zero) edges stay finite (-> 0, sliced off in the wrapper).
    sq = x * x + y * y + z * z
    inv = jax.lax.rsqrt(jnp.maximum(sq, _NORM_EPS * _NORM_EPS))
    x = x * inv
    y = y * inv
    z = z * inv

    dt = out_ref.dtype
    one = jnp.ones(x.shape, dt)

    # e3nn _spherical_harmonics polynomials, 'component' scaling sqrt(2l+1).
    out_ref[0, :, :] = one                                                  # l=0
    out_ref[1, :, :] = (SQRT3 * x).astype(dt)                               # l=1
    out_ref[2, :, :] = (SQRT3 * y).astype(dt)
    out_ref[3, :, :] = (SQRT3 * z).astype(dt)
    out_ref[4, :, :] = (SQRT15 * x * z).astype(dt)                          # l=2
    out_ref[5, :, :] = (SQRT15 * x * y).astype(dt)
    out_ref[6, :, :] = (SQRT5 * (y * y - 0.5 * (x * x + z * z))).astype(dt)
    out_ref[7, :, :] = (SQRT15 * y * z).astype(dt)
    out_ref[8, :, :] = ((0.5 * SQRT15) * (z * z - x * x)).astype(dt)
    out_ref[9, :, :] = one                                                  # field l=0


def _sph_kernel_gather(fsh_ref, ev_ref, eb_ref, out_ref, *, num_graphs):
    """fsh_ref: (B, 4) f32 in SMEM -- per-graph field SH [1, √3 fx, √3 fy, √3 fz]
       ev_ref:  (3, R, 128) f32 edge vectors
       eb_ref:  (R, 128) i32 edge -> graph index
       out_ref: (13, R, 128)"""
    _write_edge_sh(ev_ref, out_ref)
    dt = out_ref.dtype

    idx = eb_ref[...]
    # B is small and static: per-edge gather via a VPU select chain (cheap filler
    # in a mem-bound kernel), seeded with graph 0 (also covers padded edges).
    fx = jnp.full(idx.shape, fsh_ref[0, 1], jnp.float32)
    fy = jnp.full(idx.shape, fsh_ref[0, 2], jnp.float32)
    fz = jnp.full(idx.shape, fsh_ref[0, 3], jnp.float32)
    for b in range(1, num_graphs):
        m = idx == b
        fx = jnp.where(m, fsh_ref[b, 1], fx)
        fy = jnp.where(m, fsh_ref[b, 2], fy)
        fz = jnp.where(m, fsh_ref[b, 3], fz)
    out_ref[10, :, :] = fx.astype(dt)
    out_ref[11, :, :] = fy.astype(dt)
    out_ref[12, :, :] = fz.astype(dt)


def _sph_kernel_stream(ev_ref, ef_ref, out_ref):
    """Large-B fallback: ef_ref carries √3-scaled per-edge field xyz, (3, R, 128)."""
    _write_edge_sh(ev_ref, out_ref)
    dt = out_ref.dtype
    out_ref[10, :, :] = ef_ref[0].astype(dt)
    out_ref[11, :, :] = ef_ref[1].astype(dt)
    out_ref[12, :, :] = ef_ref[2].astype(dt)


def _pure_jax_forward(pos, edge_index, field_scaled, edge_batch):
    """Fused pure-JAX path (also serves as the numerical reference)."""
    ev = pos[edge_index[1]] - pos[edge_index[0]]
    n = jnp.sqrt(jnp.sum(ev * ev, axis=-1, keepdims=True))
    u = ev / jnp.maximum(n, _NORM_EPS)
    x, y, z = u[:, 0], u[:, 1], u[:, 2]
    edge_sh = jnp.stack(
        [
            jnp.ones_like(x),
            SQRT3 * x, SQRT3 * y, SQRT3 * z,
            SQRT15 * x * z,
            SQRT15 * x * y,
            SQRT5 * (y * y - 0.5 * (x * x + z * z)),
            SQRT15 * y * z,
            (0.5 * SQRT15) * (z * z - x * x),
        ],
        axis=-1,
    )
    f = field_scaled[edge_batch]
    fx, fy, fz = f[:, 0], f[:, 1], f[:, 2]
    field_sh = jnp.stack(
        [jnp.ones_like(fx), SQRT3 * fx, SQRT3 * fy, SQRT3 * fz], axis=-1
    )
    return jnp.concatenate([edge_sh, field_sh], axis=-1)


def spherical_harmonic_edge_attrs(
    pos, edge_index, batch, external_electric_field,
    *,
    electric_field_normalization: float,
    tile_rows: int = 512,                 # rows of 128 edges per grid step (sweep 128..1024)
    min_pallas_edges: int = 2048,         # below this the XLA-fused path wins
    max_select_graphs: int = 32,          # in-kernel select-chain bound; above -> stream field
    out_dtype=jnp.float32,                # jnp.bfloat16 halves output HBM traffic
    feature_major_output: bool = False,   # True -> (13, E) kernel layout, no transpose epilogue
):
    """Pallas implementation of SphericalHarmonicEdgeAttrs.forward.

    Default returns data[EDGE_ATTRS_KEY] of shape (E, 13) like the torch module;
    feature_major_output=True returns the transposed (13, E) fast-path layout."""
    pos = pos.astype(jnp.float32)
    field = external_electric_field.astype(jnp.float32)
    E = edge_index.shape[1]
    B = field.shape[0]

    # Per-graph field scaling on the tiny (B, 3) array (matches torch .div before SH).
    field_scaled = field / electric_field_normalization           # (B, 3)
    edge_batch = batch[edge_index[0]].astype(jnp.int32)           # (E,)

    if E < min_pallas_edges:
        # Small-E fallback: pallas_call launch + padding overhead exceeds the work.
        out = _pure_jax_forward(pos, edge_index, field_scaled, edge_batch).astype(out_dtype)
        return out.T if feature_major_output else out

    # ---- plain-JAX indexing glue producing (component, edge) directly (no transposes) ----
    pos_t = pos.T                                                  # (3, N)
    ev_t = pos_t[:, edge_index[1]] - pos_t[:, edge_index[0]]       # (3, E)

    # ---- tiling: edges fill sublanes AND lanes of every vreg ----
    out_itemsize = jnp.dtype(out_dtype).itemsize
    align = max(8, 32 // out_itemsize)                 # 8 rows (f32) / 16 rows (bf16)
    rows = pl.cdiv(E, _LANES)
    if rows <= align:
        tile_r = rows                                  # full-extent block, single step
    else:
        cap = max(align, (tile_rows // align) * align)
        half = _round_up(pl.cdiv(rows, 2), align)      # >= 2 grid steps (v7x: 2 TCs)
        tile_r = min(cap, half)

    gather_in_kernel = B <= max_select_graphs
    in_bytes = 3 * 4 + (4 if gather_in_kernel else 3 * 4)          # per edge, per step
    out_bytes = N_OUT * out_itemsize
    per_row_bytes = 2 * _LANES * (in_bytes + out_bytes)            # double-buffered blocks

    # Generation-safe VMEM budget: stay well under v7x's 64 MiB physical VMEM.
    try:
        vmem_phys = pltpu.get_tpu_info().vmem_capacity_bytes
    except Exception:
        vmem_phys = 64 * 1024 * 1024
    budget = min(48 * 1024 * 1024, (vmem_phys * 3) // 4)
    max_tile = max(align, (budget // per_row_bytes) // align * align)
    tile_r = min(tile_r, max_tile)

    rows_pad = _round_up(rows, tile_r)
    E_pad = rows_pad * _LANES
    need = per_row_bytes * tile_r
    vmem_limit = int(min(budget, max(16 * 1024 * 1024, need + need // 2)))

    ev3 = jnp.pad(ev_t, ((0, 0), (0, E_pad - E))).reshape(3, rows_pad, _LANES)

    if gather_in_kernel:
        # Tiny per-graph field-SH table in SMEM + 4 B/edge graph indices.
        fsh = jnp.concatenate(
            [jnp.ones((B, 1), jnp.float32), SQRT3 * field_scaled], axis=1)   # (B, 4)
        eb2 = jnp.pad(edge_batch, (0, E_pad - E)).reshape(rows_pad, _LANES)
        kernel = functools.partial(_sph_kernel_gather, num_graphs=B)
        in_specs = [
            pl.BlockSpec(memory_space=pltpu.MemorySpace.SMEM),
            pl.BlockSpec((3, tile_r, _LANES), lambda i: (0, i, 0)),
            pl.BlockSpec((tile_r, _LANES), lambda i: (i, 0)),
        ]
        args = (fsh, ev3, eb2)
    else:
        ef_t = (SQRT3 * field_scaled).T[:, edge_batch]                        # (3, E)
        ef3 = jnp.pad(ef_t, ((0, 0), (0, E_pad - E))).reshape(3, rows_pad, _LANES)
        kernel = _sph_kernel_stream
        in_specs = [
            pl.BlockSpec((3, tile_r, _LANES), lambda i: (0, i, 0)),
            pl.BlockSpec((3, tile_r, _LANES), lambda i: (0, i, 0)),
        ]
        args = (ev3, ef3)

    out3 = pl.pallas_call(
        kernel,
        out_shape=jax.ShapeDtypeStruct((N_OUT, rows_pad, _LANES), out_dtype),
        grid=(rows_pad // tile_r,),
        in_specs=in_specs,
        out_specs=pl.BlockSpec((N_OUT, tile_r, _LANES), lambda i: (0, i, 0)),
        compiler_params=pltpu.CompilerParams(
            dimension_semantics=("parallel",),
            vmem_limit_bytes=vmem_limit,
        ),
    )(*args)

    if feature_major_output:
        # Fast path: kernel-native (13, E) layout, no transpose epilogue.
        return out3.reshape(N_OUT, E_pad)[:, :E]

    # torch-compatible (E, 13) layout.
    # TODO(synk): fuse this layout change into the consumer's first kernel via its
    # BlockSpec index_map (or pass feature_major_output=True) to drop ~104 B/edge.
    return out3.transpose(1, 2, 0).reshape(E_pad, N_OUT)[:E]


def _reference(pos, edge_index, batch, ext_field, field_norm):
    """Pure-JAX reference with the exact torch/e3nn ordering of operations."""
    field_scaled = ext_field.astype(jnp.float32) / field_norm
    edge_batch = batch[edge_index[0]]
    return _pure_jax_forward(pos.astype(jnp.float32), edge_index, field_scaled, edge_batch)


if __name__ == "__main__":
    key = jax.random.PRNGKey(0)
    k_pos, k_edge, k_field = jax.random.split(key, 3)

    N_ATOMS = 64       # atoms
    N_GRAPHS = 2       # graphs in the batch
    N_EDGES = 20000    # edges: exercises multi-step grid + row padding in the kernel
    FIELD_NORM = 0.1   # electric_field_normalization hyperparameter

    pos = jax.random.normal(k_pos, (N_ATOMS, 3), dtype=jnp.float32)
    edge_index = jax.random.randint(k_edge, (2, N_EDGES), 0, N_ATOMS, dtype=jnp.int32)
    batch = jnp.concatenate(
        [jnp.zeros((N_ATOMS // 2,), jnp.int32), jnp.ones((N_ATOMS // 2,), jnp.int32)]
    )
    external_electric_field = jax.random.normal(k_field, (N_GRAPHS, 3), dtype=jnp.float32)

    ref = _reference(pos, edge_index, batch, external_electric_field, FIELD_NORM)

    base = functools.partial(
        spherical_harmonic_edge_attrs,
        electric_field_normalization=FIELD_NORM,
    )

    # ---- default path: torch-shaped (E, 13) float32 ----
    fwd = jax.jit(base)
    out = jax.block_until_ready(fwd(pos, edge_index, batch, external_electric_field))
    assert out.shape == (N_EDGES, N_OUT), out.shape
    assert jnp.allclose(out, ref, rtol=1e-5, atol=1e-5), float(jnp.max(jnp.abs(out - ref)))

    # ---- feature-major fast path: (13, E), no transpose epilogue ----
    fwd_fm = jax.jit(functools.partial(base, feature_major_output=True))
    out_fm = jax.block_until_ready(fwd_fm(pos, edge_index, batch, external_electric_field))
    assert out_fm.shape == (N_OUT, N_EDGES), out_fm.shape
    assert jnp.allclose(out_fm, ref.T, rtol=1e-5, atol=1e-5)

    # ---- streamed-field kernel variant (force the large-B code path) ----
    fwd_stream = jax.jit(functools.partial(base, max_select_graphs=0))
    out_st = jax.block_until_ready(fwd_stream(pos, edge_index, batch, external_electric_field))
    assert jnp.allclose(out_st, ref, rtol=1e-5, atol=1e-5)

    # ---- bfloat16 output option (math stays f32; halves output HBM traffic) ----
    fwd_bf16 = jax.jit(functools.partial(base, out_dtype=jnp.bfloat16,
                                         feature_major_output=True))
    out_bf = jax.block_until_ready(fwd_bf16(pos, edge_index, batch, external_electric_field))
    assert out_bf.dtype == jnp.bfloat16
    assert jnp.allclose(out_bf.astype(jnp.float32), ref.T, rtol=2e-2, atol=2e-2)

    # ---- small-E fallback path ----
    small_idx = edge_index[:, :100]
    out_small = jax.block_until_ready(fwd(pos, small_idx, batch, external_electric_field))
    ref_small = _reference(pos, small_idx, batch, external_electric_field, FIELD_NORM)
    assert out_small.shape == (100, N_OUT), out_small.shape
    assert jnp.allclose(out_small, ref_small, rtol=1e-5, atol=1e-5)

    print("KERNEL_OK")
</pallas_src>

<mosaic_0001>
module attributes {stable_mosaic.version = 11 : i64} {
  func.func @_sph_kernel_gather(%arg0: i32, %arg1: memref<2x4xf32, #tpu.memory_space<smem>>, %arg2: memref<3x80x128xf32, #tpu.memory_space<vmem>>, %arg3: memref<80x128xi32, #tpu.memory_space<vmem>>, %arg4: memref<13x80x128xf32, #tpu.memory_space<vmem>>) attributes {dimension_semantics = [#tpu.dimension_semantics<parallel>], iteration_bounds = array<i64: 2>, scalar_prefetch = 0 : i64, scratch_operands = 0 : i64, tpu.core_type = #tpu.core_type<tc>, window_params = [{transform_indices = @transform_0, window_bounds = array<i64: 2, 4>}, {transform_indices = @transform_1, window_bounds = array<i64: 3, 80, 128>}, {transform_indices = @transform_2, window_bounds = array<i64: 80, 128>}, {transform_indices = @transform_3, window_bounds = array<i64: 13, 80, 128>}]} {
    %c0 = arith.constant 0 : index
    %c0_0 = arith.constant 0 : index
    %c0_1 = arith.constant 0 : index
    %0 = vector.load %arg2[%c0, %c0_0, %c0_1] : memref<3x80x128xf32, #tpu.memory_space<vmem>>, vector<1x80x128xf32>
    %1 = vector.shape_cast %0 : vector<1x80x128xf32> to vector<80x128xf32>
    %c1 = arith.constant 1 : index
    %c0_2 = arith.constant 0 : index
    %c0_3 = arith.constant 0 : index
    %2 = vector.load %arg2[%c1, %c0_2, %c0_3] : memref<3x80x128xf32, #tpu.memory_space<vmem>>, vector<1x80x128xf32>
    %3 = vector.shape_cast %2 : vector<1x80x128xf32> to vector<80x128xf32>
    %c2 = arith.constant 2 : index
    %c0_4 = arith.constant 0 : index
    %c0_5 = arith.constant 0 : index
    %4 = vector.load %arg2[%c2, %c0_4, %c0_5] : memref<3x80x128xf32, #tpu.memory_space<vmem>>, vector<1x80x128xf32>
    %5 = vector.shape_cast %4 : vector<1x80x128xf32> to vector<80x128xf32>
    %6 = arith.mulf %1, %1 : vector<80x128xf32>
    %7 = arith.mulf %3, %3 : vector<80x128xf32>
    %8 = arith.addf %6, %7 : vector<80x128xf32>
    %9 = arith.mulf %5, %5 : vector<80x128xf32>
    %10 = arith.addf %8, %9 : vector<80x128xf32>
    %cst = arith.constant 1.000000e-24 : f32
    %11 = vector.broadcast %cst : f32 to vector<80x128xf32>
    %12 = arith.maximumf %10, %11 : vector<80x128xf32>
    %13 = math.rsqrt %12 : vector<80x128xf32>
    %14 = arith.mulf %1, %13 : vector<80x128xf32>
    %15 = arith.mulf %3, %13 : vector<80x128xf32>
    %16 = arith.mulf %5, %13 : vector<80x128xf32>
    %cst_6 = arith.constant 1.000000e+00 : f32
    %17 = vector.broadcast %cst_6 : f32 to vector<80x128xf32>
    %c0_7 = arith.constant 0 : index
    %c0_8 = arith.constant 0 : index
    %c0_9 = arith.constant 0 : index
    %18 = vector.load %arg4[%c0_7, %c0_8, %c0_9] : memref<13x80x128xf32, #tpu.memory_space<vmem>>, vector<1x80x128xf32>
    %19 = vector.shape_cast %18 : vector<1x80x128xf32> to vector<80x128xf32>
    %20 = vector.shape_cast %17 : vector<80x128xf32> to vector<1x80x128xf32>
    tpu.vector_store %arg4[%c0_7, %c0_8, %c0_9], %20 {strides = array<i32>} : memref<13x80x128xf32, #tpu.memory_space<vmem>>, vector<1x80x128xf32>,
    %cst_10 = arith.constant 1.73205078 : f32
    %21 = vector.broadcast %cst_10 : f32 to vector<80x128xf32>
    %22 = arith.mulf %21, %14 : vector<80x128xf32>
    %c1_11 = arith.constant 1 : index
    %c0_12 = arith.constant 0 : index
    %c0_13 = arith.constant 0 : index
    %23 = vector.load %arg4[%c1_11, %c0_12, %c0_13] : memref<13x80x128xf32, #tpu.memory_space<vmem>>, vector<1x80x128xf32>
    %24 = vector.shape_cast %23 : vector<1x80x128xf32> to vector<80x128xf32>
    %25 = vector.shape_cast %22 : vector<80x128xf32> to vector<1x80x128xf32>
    tpu.vector_store %arg4[%c1_11, %c0_12, %c0_13], %25 {strides = array<i32>} : memref<13x80x128xf32, #tpu.memory_space<vmem>>, vector<1x80x128xf32>,
    %cst_14 = arith.constant 1.73205078 : f32
    %26 = vector.broadcast %cst_14 : f32 to vector<80x128xf32>
    %27 = arith.mulf %26, %15 : vector<80x128xf32>
    %c2_15 = arith.constant 2 : index
    %c0_16 = arith.constant 0 : index
    %c0_17 = arith.constant 0 : index
    %28 = vector.load %arg4[%c2_15, %c0_16, %c0_17] : memref<13x80x128xf32, #tpu.memory_space<vmem>>, vector<1x80x128xf32>
    %29 = vector.shape_cast %28 : vector<1x80x128xf32> to vector<80x128xf32>
    %30 = vector.shape_cast %27 : vector<80x128xf32> to vector<1x80x128xf32>
    tpu.vector_store %arg4[%c2_15, %c0_16, %c0_17], %30 {strides = array<i32>} : memref<13x80x128xf32, #tpu.memory_space<vmem>>, vector<1x80x128xf32>,
    %cst_18 = arith.constant 1.73205078 : f32
    %31 = vector.broadcast %cst_18 : f32 to vector<80x128xf32>
    %32 = arith.mulf %31, %16 : vector<80x128xf32>
    %c3 = arith.constant 3 : index
    %c0_19 = arith.constant 0 : index
    %c0_20 = arith.constant 0 : index
    %33 = vector.load %arg4[%c3, %c0_19, %c0_20] : memref<13x80x128xf32, #tpu.memory_space<vmem>>, vector<1x80x128xf32>
    %34 = vector.shape_cast %33 : vector<1x80x128xf32> to vector<80x128xf32>
    %35 = vector.shape_cast %32 : vector<80x128xf32> to vector<1x80x128xf32>
    tpu.vector_store %arg4[%c3, %c0_19, %c0_20], %35 {strides = array<i32>} : memref<13x80x128xf32, #tpu.memory_space<vmem>>, vector<1x80x128xf32>,
    %cst_21 = arith.constant 3.87298346 : f32
    %36 = vector.broadcast %cst_21 : f32 to vector<80x128xf32>
    %37 = arith.mulf %36, %14 : vector<80x128xf32>
    %38 = arith.mulf %37, %16 : vector<80x128xf32>
    %c4 = arith.constant 4 : index
    %c0_22 = arith.constant 0 : index
    %c0_23 = arith.constant 0 : index
    %39 = vector.load %arg4[%c4, %c0_22, %c0_23] : memref<13x80x128xf32, #tpu.memory_space<vmem>>, vector<1x80x128xf32>
    %40 = vector.shape_cast %39 : vector<1x80x128xf32> to vector<80x128xf32>
    %41 = vector.shape_cast %38 : vector<80x128xf32> to vector<1x80x128xf32>
    tpu.vector_store %arg4[%c4, %c0_22, %c0_23], %41 {strides = array<i32>} : memref<13x80x128xf32, #tpu.memory_space<vmem>>, vector<1x80x128xf32>,
    %cst_24 = arith.constant 3.87298346 : f32
    %42 = vector.broadcast %cst_24 : f32 to vector<80x128xf32>
    %43 = arith.mulf %42, %14 : vector<80x128xf32>
    %44 = arith.mulf %43, %15 : vector<80x128xf32>
    %c5 = arith.constant 5 : index
    %c0_25 = arith.constant 0 : index
    %c0_26 = arith.constant 0 : index
    %45 = vector.load %arg4[%c5, %c0_25, %c0_26] : memref<13x80x128xf32, #tpu.memory_space<vmem>>, vector<1x80x128xf32>
    %46 = vector.shape_cast %45 : vector<1x80x128xf32> to vector<80x128xf32>
    %47 = vector.shape_cast %44 : vector<80x128xf32> to vector<1x80x128xf32>
    tpu.vector_store %arg4[%c5, %c0_25, %c0_26], %47 {strides = array<i32>} : memref<13x80x128xf32, #tpu.memory_space<vmem>>, vector<1x80x128xf32>,
    %48 = arith.mulf %15, %15 : vector<80x128xf32>
    %49 = arith.mulf %14, %14 : vector<80x128xf32>
    %50 = arith.mulf %16, %16 : vector<80x128xf32>
    %51 = arith.addf %49, %50 : vector<80x128xf32>
    %cst_27 = arith.constant 5.000000e-01 : f32
    %52 = vector.broadcast %cst_27 : f32 to vector<80x128xf32>
    %53 = arith.mulf %52, %51 : vector<80x128xf32>
    %54 = arith.subf %48, %53 : vector<80x128xf32>
    %cst_28 = arith.constant 2.23606801 : f32
    %55 = vector.broadcast %cst_28 : f32 to vector<80x128xf32>
    %56 = arith.mulf %55, %54 : vector<80x128xf32>
    %c6 = arith.constant 6 : index
    %c0_29 = arith.constant 0 : index
    %c0_30 = arith.constant 0 : index
    %57 = vector.load %arg4[%c6, %c0_29, %c0_30] : memref<13x80x128xf32, #tpu.memory_space<vmem>>, vector<1x80x128xf32>
    %58 = vector.shape_cast %57 : vector<1x80x128xf32> to vector<80x128xf32>
    %59 = vector.shape_cast %56 : vector<80x128xf32> to vector<1x80x128xf32>
    tpu.vector_store %arg4[%c6, %c0_29, %c0_30], %59 {strides = array<i32>} : memref<13x80x128xf32, #tpu.memory_space<vmem>>, vector<1x80x128xf32>,
    %cst_31 = arith.constant 3.87298346 : f32
    %60 = vector.broadcast %cst_31 : f32 to vector<80x128xf32>
    %61 = arith.mulf %60, %15 : vector<80x128xf32>
    %62 = arith.mulf %61, %16 : vector<80x128xf32>
    %c7 = arith.constant 7 : index
    %c0_32 = arith.constant 0 : index
    %c0_33 = arith.constant 0 : index
    %63 = vector.load %arg4[%c7, %c0_32, %c0_33] : memref<13x80x128xf32, #tpu.memory_space<vmem>>, vector<1x80x128xf32>
    %64 = vector.shape_cast %63 : vector<1x80x128xf32> to vector<80x128xf32>
    %65 = vector.shape_cast %62 : vector<80x128xf32> to vector<1x80x128xf32>
    tpu.vector_store %arg4[%c7, %c0_32, %c0_33], %65 {strides = array<i32>} : memref<13x80x128xf32, #tpu.memory_space<vmem>>, vector<1x80x128xf32>,
    %66 = arith.mulf %16, %16 : vector<80x128xf32>
    %67 = arith.mulf %14, %14 : vector<80x128xf32>
    %68 = arith.subf %66, %67 : vector<80x128xf32>
    %cst_34 = arith.constant 1.93649173 : f32
    %69 = vector.broadcast %cst_34 : f32 to vector<80x128xf32>
    %70 = arith.mulf %69, %68 : vector<80x128xf32>
    %c8 = arith.constant 8 : index
    %c0_35 = arith.constant 0 : index
    %c0_36 = arith.constant 0 : index
    %71 = vector.load %arg4[%c8, %c0_35, %c0_36] : memref<13x80x128xf32, #tpu.memory_space<vmem>>, vector<1x80x128xf32>
    %72 = vector.shape_cast %71 : vector<1x80x128xf32> to vector<80x128xf32>
    %73 = vector.shape_cast %70 : vector<80x128xf32> to vector<1x80x128xf32>
    tpu.vector_store %arg4[%c8, %c0_35, %c0_36], %73 {strides = array<i32>} : memref<13x80x128xf32, #tpu.memory_space<vmem>>, vector<1x80x128xf32>,
    %c9 = arith.constant 9 : index
    %c0_37 = arith.constant 0 : index
    %c0_38 = arith.constant 0 : index
    %74 = vector.load %arg4[%c9, %c0_37, %c0_38] : memref<13x80x128xf32, #tpu.memory_space<vmem>>, vector<1x80x128xf32>
    %75 = vector.shape_cast %74 : vector<1x80x128xf32> to vector<80x128xf32>
    %76 = vector.shape_cast %17 : vector<80x128xf32> to vector<1x80x128xf32>
    tpu.vector_store %arg4[%c9, %c0_37, %c0_38], %76 {strides = array<i32>} : memref<13x80x128xf32, #tpu.memory_space<vmem>>, vector<1x80x128xf32>,
    %c0_39 = arith.constant 0 : index
    %c0_40 = arith.constant 0 : index
    %77 = vector.load %arg3[%c0_39, %c0_40] : memref<80x128xi32, #tpu.memory_space<vmem>>, vector<80x128xi32>
    %c0_41 = arith.constant 0 : index
    %c1_42 = arith.constant 1 : index
    %78 = memref.load %arg1[%c0_41, %c1_42] : memref<2x4xf32, #tpu.memory_space<smem>>
    %79 = vector.broadcast %78 : f32 to vector<80x128xf32>
    %c0_43 = arith.constant 0 : index
    %c2_44 = arith.constant 2 : index
    %80 = memref.load %arg1[%c0_43, %c2_44] : memref<2x4xf32, #tpu.memory_space<smem>>
    %81 = vector.broadcast %80 : f32 to vector<80x128xf32>
    %c0_45 = arith.constant 0 : index
    %c3_46 = arith.constant 3 : index
    %82 = memref.load %arg1[%c0_45, %c3_46] : memref<2x4xf32, #tpu.memory_space<smem>>
    %83 = vector.broadcast %82 : f32 to vector<80x128xf32>
    %c1_i32 = arith.constant 1 : i32
    %84 = vector.broadcast %c1_i32 : i32 to vector<80x128xi32>
    %85 = arith.cmpi eq, %77, %84 : vector<80x128xi32>
    %c1_47 = arith.constant 1 : index
    %c1_48 = arith.constant 1 : index
    %86 = memref.load %arg1[%c1_47, %c1_48] : memref<2x4xf32, #tpu.memory_space<smem>>
    %87 = vector.broadcast %86 : f32 to vector<80x128xf32>
    %88 = arith.select %85, %87, %79 : vector<80x128xi1>, vector<80x128xf32>
    %c1_49 = arith.constant 1 : index
    %c2_50 = arith.constant 2 : index
    %89 = memref.load %arg1[%c1_49, %c2_50] : memref<2x4xf32, #tpu.memory_space<smem>>
    %90 = vector.broadcast %89 : f32 to vector<80x128xf32>
    %91 = arith.select %85, %90, %81 : vector<80x128xi1>, vector<80x128xf32>
    %c1_51 = arith.constant 1 : index
    %c3_52 = arith.constant 3 : index
    %92 = memref.load %arg1[%c1_51, %c3_52] : memref<2x4xf32, #tpu.memory_space<smem>>
    %93 = vector.broadcast %92 : f32 to vector<80x128xf32>
    %94 = arith.select %85, %93, %83 : vector<80x128xi1>, vector<80x128xf32>
    %c10 = arith.constant 10 : index
    %c0_53 = arith.constant 0 : index
    %c0_54 = arith.constant 0 : index
    %95 = vector.load %arg4[%c10, %c0_53, %c0_54] : memref<13x80x128xf32, #tpu.memory_space<vmem>>, vector<1x80x128xf32>
    %96 = vector.shape_cast %95 : vector<1x80x128xf32> to vector<80x128xf32>
    %97 = vector.shape_cast %88 : vector<80x128xf32> to vector<1x80x128xf32>
    tpu.vector_store %arg4[%c10, %c0_53, %c0_54], %97 {strides = array<i32>} : memref<13x80x128xf32, #tpu.memory_space<vmem>>, vector<1x80x128xf32>,
    %c11 = arith.constant 11 : index
    %c0_55 = arith.constant 0 : index
    %c0_56 = arith.constant 0 : index
    %98 = vector.load %arg4[%c11, %c0_55, %c0_56] : memref<13x80x128xf32, #tpu.memory_space<vmem>>, vector<1x80x128xf32>
    %99 = vector.shape_cast %98 : vector<1x80x128xf32> to vector<80x128xf32>
    %100 = vector.shape_cast %91 : vector<80x128xf32> to vector<1x80x128xf32>
    tpu.vector_store %arg4[%c11, %c0_55, %c0_56], %100 {strides = array<i32>} : memref<13x80x128xf32, #tpu.memory_space<vmem>>, vector<1x80x128xf32>,
    %c12 = arith.constant 12 : index
    %c0_57 = arith.constant 0 : index
    %c0_58 = arith.constant 0 : index
    %101 = vector.load %arg4[%c12, %c0_57, %c0_58] : memref<13x80x128xf32, #tpu.memory_space<vmem>>, vector<1x80x128xf32>
    %102 = vector.shape_cast %101 : vector<1x80x128xf32> to vector<80x128xf32>
    %103 = vector.shape_cast %94 : vector<80x128xf32> to vector<1x80x128xf32>
    tpu.vector_store %arg4[%c12, %c0_57, %c0_58], %103 {strides = array<i32>} : memref<13x80x128xf32, #tpu.memory_space<vmem>>, vector<1x80x128xf32>,
    return
  }
  func.func @transform_0(%arg0: i32) -> (i32, i32) {
    %c0_i32 = arith.constant 0 : i32
    %c0_i32_0 = arith.constant 0 : i32
    %c0_i32_1 = arith.constant 0 : i32
    return %c0_i32, %c0_i32_0 : i32, i32
  }
  func.func @transform_1(%arg0: i32) -> (i32, i32, i32) {
    %c0_i32 = arith.constant 0 : i32
    %c0_i32_0 = arith.constant 0 : i32
    %c0_i32_1 = arith.constant 0 : i32
    return %c0_i32, %arg0, %c0_i32_0 : i32, i32, i32
  }
  func.func @transform_2(%arg0: i32) -> (i32, i32) {
    %c0_i32 = arith.constant 0 : i32
    %c0_i32_0 = arith.constant 0 : i32
    return %arg0, %c0_i32 : i32, i32
  }
  func.func @transform_3(%arg0: i32) -> (i32, i32, i32) {
    %c0_i32 = arith.constant 0 : i32
    %c0_i32_0 = arith.constant 0 : i32
    %c0_i32_1 = arith.constant 0 : i32
    return %c0_i32, %arg0, %c0_i32_0 : i32, i32, i32
  }
}

</mosaic_0001>

<bundles_post_ra>
// kernel: spherical_harmonic_edge_attrs.1
= control target key start
LH: loop header
LB: loop body
LE: loop exit
PB: predicated region body
PF: predicated region fallthrough
CT: control target
= control target key end

     0   :  { %8 = vsyncpa [#allocation3], 0  ;;  %s1782_s12 = smov 0   ;;  %s1784_s13 = smov 0   ;;  %s2947_s0 = inlined_call_operand.vmem [shape: f32[2,4], index: 0, kind: input, shape index: {}]   ;;  %s2948_s1 = inlined_call_operand.vmem [shape: f32[3,160,128], index: 1, kind: input, shape index: {}]   ;;  %s2949_s2 = inlined_call_operand.vmem [shape: s32[160,128], index: 2, kind: input, shape index: {}]   ;;  %s2950_s3 = inlined_call_operand.vmem [shape: f32[13,160,128], index: 3, kind: output, shape index: {}]  }
   0x1   :  { %s1786_s14 = smov 0  }
   0x2 LB: > { %s1798_s15 = sadd.s32 4294967295, %s1758_s14   ;;  %s1801_s16 = sadd.s32 1, %s1758_s14   ;;  %s1758_s14 = sphi %s1786_s14, %s2958_s14   ;;  %s1754_s13 = sphi %s1784_s13, %s2957_s13   ;;  %s1750_s12 = sphi %s1782_s12, %s2956_s12  }
   0x3   : > { %s39_s17 = ssub.s32 %s1758_s14, %s1801_s16  ;;  %s42_s18 = sadd.s32 1, %s1754_s13 }
   0x4   : > { %p40_p0 = scmp.eq.s32.totalorder %s39_s17, 0  ;;  %p49_p1 = scmp.ne.s32.totalorder %s1754_s13, %s1750_s12 }
   0x5   : > { %p50_p2 = scmp.eq.s32.totalorder %s1758_s14, 0  ;;  %p105_p3 = scmp.eq.s32.totalorder %s1798_s15, 1 }
   0x6   : > { %s1811_s19 = scalar_select %p40_p0, %s1754_s13, %s42_s18  }
   0x7   : > { %p1813_p4 = por %p50_p2, %p49_p1  ;;  %p1817_p5 = por %p105_p3, %p49_p1 }
   0x8   : > { %p1500_p6 = scmp.ge.s32.totalorder %s1758_s14, 1  ;;  %p118_p7 = scmp.lt.s32.totalorder %s1758_s14, 3 }
   0x9   : > { %s2952_s21 = scalar_select %p1817_p5, 1, 0 }
   0xa   : > { %p1669_p8 = scmp.eq.s32.totalorder %s1798_s15, 0  ;;  %p1824_p9 = pnand %p1500_p6, %p118_p7 }
   0xb   : > { %s131_s25 = sshll.u32 %s2947_s0, 4  ;;  %s132_s25 = int_to_ptr.vmem [resolvable:$true] %s131_s25 }
   0xc   : > { %p1665_p10 = pneg %p1824_p9  ;;  %s1717_s26 = scalar_lea.vmem %s132_s25, 32 }
   0xd   : > { %p1718_p12 = scmp.ne.s32.totalorder %s132_s25, %s1717_s26  ;;  %p1725_p2 = scmp.lt.s32.totalorder %s132_s25, %s132_s25 }
   0xe   : > { %p1666_p11 = pnand %p1669_p8, %p1665_p10  ;;  %p1726_p3 = scmp.lt.s32.totalorder %s1717_s26, %s1717_s26 }
  0x10   : > { %p1719_p13 = pneg %p1666_p11  ;;  %p1727_p6 = por %p1726_p3, %p1725_p2 }
  0x12   : > { %p1720_p0 = pnand %p1719_p13, %p1718_p12 }
  0x14   : > { %p1721_p1 = pneg %p1720_p0 }
  0x16   : > { %p1728_p7 = pnand %p1727_p6, %p1721_p1 }
  0x18   : > { %1731 = shalt.err (!%p1728_p7)
}
  0x19   : > { %s1760_s27 = smov [#allocation2]   ;;  %p1502_p5 = scmp.ge.s32.totalorder %s1758_s14, 2 }
  0x1a   : > { %1668 = dma.vmem_to_smem (!%p1666_p11), %s132_s25, 32, %s1760_s27, [#allocation3]  }
  0x1b   : > { %138 = sbr.rel (%p1502_p5) target bundleno = 54 (0x36), region = 20 }
  0x22   : > { %141 = sbr.rel (!%p1813_p4) target bundleno = 54 (0x36), region = 24  ;;  %s143_s28 = sand.u32 (%p1813_p4), 1, %s1754_s13  }
  0x23   : > { %s1656_s29 = smul.u32 (%p1813_p4), 80, %s1758_s14 }
  0x24   : > { %s1658_s30 = smul.u32 (%p1813_p4), 240, %s143_s28 }
  0x25   : > { %s1843_s6 = scalar_lea.vmem (%p1813_p4), %s2948_s1, %s1656_s29 }
  0x26   : > { %v234_v0 = vld [vmem:[%s1843_s6] sm:$0xff] (%p1813_p4)  ;;  %v236_v1 = vld [vmem:[%s1843_s6 + $0x8] sm:$0xff] (%p1813_p4)  ;;  %v238_v2 = vld [vmem:[%s1843_s6 + $0x10] sm:$0xff] (%p1813_p4)  ;;  %s1848_s7 = scalar_lea.vmem (%p1813_p4), [#allocation4], %s1658_s30 }
  0x27   : > { %235 = vst [vmem:[%s1848_s7] sm:$0xff] (%p1813_p4), %v234_v0  ;;  %237 = vst [vmem:[%s1848_s7 + $0x8] sm:$0xff] (%p1813_p4), %v236_v1  ;;  %v240_v3 = vld [vmem:[%s1843_s6 + $0x18] sm:$0xff] (%p1813_p4)  ;;  %v242_v4 = vld [vmem:[%s1843_s6 + $0x20] sm:$0xff] (%p1813_p4) }
  0x28   : > { %239 = vst [vmem:[%s1848_s7 + $0x10] sm:$0xff] (%p1813_p4), %v238_v2  ;;  %v244_v5 = vld [vmem:[%s1843_s6 + $0x28] sm:$0xff] (%p1813_p4)  ;;  %241 = vst [vmem:[%s1848_s7 + $0x18] sm:$0xff] (%p1813_p4), %v240_v3  ;;  %v246_v6 = vld [vmem:[%s1843_s6 + $0x30] sm:$0xff] (%p1813_p4) }
  0x29   : > { %243 = vst [vmem:[%s1848_s7 + $0x20] sm:$0xff] %v242_v4  ;;  %245 = vst [vmem:[%s1848_s7 + $0x28] sm:$0xff] %v244_v5  ;;  %v248_v7 = vld [vmem:[%s1843_s6 + $0x38] sm:$0xff]  ;;  %v250_v8 = vld [vmem:[%s1843_s6 + $0x40] sm:$0xff] }
  0x2a   : > { %247 = vst [vmem:[%s1848_s7 + $0x30] sm:$0xff] %v246_v6  ;;  %249 = vst [vmem:[%s1848_s7 + $0x38] sm:$0xff] %v248_v7  ;;  %v252_v9 = vld [vmem:[%s1843_s6 + $0x48] sm:$0xff]  ;;  %v254_v10 = vld [vmem:[%s1843_s6 + $0xa0] sm:$0xff] }
  0x2b   : > { %251 = vst [vmem:[%s1848_s7 + $0x40] sm:$0xff] %v250_v8  ;;  %v256_v11 = vld [vmem:[%s1843_s6 + $0xa8] sm:$0xff]  ;;  %253 = vst [vmem:[%s1848_s7 + $0x48] sm:$0xff] %v252_v9  ;;  %v258_v12 = vld [vmem:[%s1843_s6 + $0xb0] sm:$0xff] }
  0x2c   : > { %255 = vst [vmem:[%s1848_s7 + $0x50] sm:$0xff] %v254_v10  ;;  %257 = vst [vmem:[%s1848_s7 + $0x58] sm:$0xff] %v256_v11  ;;  %v260_v13 = vld [vmem:[%s1843_s6 + $0xb8] sm:$0xff]  ;;  %v262_v14 = vld [vmem:[%s1843_s6 + $0xc0] sm:$0xff] }
  0x2d   : > { %259 = vst [vmem:[%s1848_s7 + $0x60] sm:$0xff] %v258_v12  ;;  %261 = vst [vmem:[%s1848_s7 + $0x68] sm:$0xff] %v260_v13  ;;  %v264_v15 = vld [vmem:[%s1843_s6 + $0xc8] sm:$0xff]  ;;  %v266_v16 = vld [vmem:[%s1843_s6 + $0xd0] sm:$0xff] }
  0x2e   : > { %263 = vst [vmem:[%s1848_s7 + $0x70] sm:$0xff] %v262_v14  ;;  %v268_v17 = vld [vmem:[%s1843_s6 + $0xd8] sm:$0xff]  ;;  %265 = vst [vmem:[%s1848_s7 + $0x78] sm:$0xff] %v264_v15  ;;  %v270_v18 = vld [vmem:[%s1843_s6 + $0xe0] sm:$0xff] }
  0x2f   : > { %267 = vst [vmem:[%s1848_s7 + $0x80] sm:$0xff] %v266_v16  ;;  %269 = vst [vmem:[%s1848_s7 + $0x88] sm:$0xff] %v268_v17  ;;  %v272_v19 = vld [vmem:[%s1843_s6 + $0xe8] sm:$0xff]  ;;  %v274_v20 = vld [vmem:[%s1843_s6 + $0x140] sm:$0xff] }
  0x30   : > { %271 = vst [vmem:[%s1848_s7 + $0x90] sm:$0xff] %v270_v18  ;;  %273 = vst [vmem:[%s1848_s7 + $0x98] sm:$0xff] %v272_v19  ;;  %v276_v21 = vld [vmem:[%s1843_s6 + $0x148] sm:$0xff]  ;;  %v278_v22 = vld [vmem:[%s1843_s6 + $0x150] sm:$0xff] }
  0x31   : > { %275 = vst [vmem:[%s1848_s7 + $0xa0] sm:$0xff] %v274_v20  ;;  %v280_v23 = vld [vmem:[%s1843_s6 + $0x158] sm:$0xff]  ;;  %277 = vst [vmem:[%s1848_s7 + $0xa8] sm:$0xff] %v276_v21  ;;  %v282_v24 = vld [vmem:[%s1843_s6 + $0x160] sm:$0xff] }
  0x32   : > { %279 = vst [vmem:[%s1848_s7 + $0xb0] sm:$0xff] %v278_v22  ;;  %281 = vst [vmem:[%s1848_s7 + $0xb8] sm:$0xff] %v280_v23  ;;  %v284_v25 = vld [vmem:[%s1843_s6 + $0x168] sm:$0xff]  ;;  %v286_v26 = vld [vmem:[%s1843_s6 + $0x170] sm:$0xff] }
  0x33   : > { %283 = vst [vmem:[%s1848_s7 + $0xc0] sm:$0xff] %v282_v24  ;;  %285 = vst [vmem:[%s1848_s7 + $0xc8] sm:$0xff] %v284_v25  ;;  %v288_v27 = vld [vmem:[%s1843_s6 + $0x178] sm:$0xff]  ;;  %v290_v28 = vld [vmem:[%s1843_s6 + $0x180] sm:$0xff] }
  0x34   : > { %287 = vst [vmem:[%s1848_s7 + $0xd0] sm:$0xff] %v286_v26  ;;  %v292_v29 = vld [vmem:[%s1843_s6 + $0x188] sm:$0xff]  ;;  %289 = vst [vmem:[%s1848_s7 + $0xd8] sm:$0xff] %v288_v27 }
  0x35   : > { %291 = vst [vmem:[%s1848_s7 + $0xe0] sm:$0xff] %v290_v28  ;;  %293 = vst [vmem:[%s1848_s7 + $0xe8] sm:$0xff] %v292_v29 }
  0x36 PF: > { %311 = sbr.rel (%p1824_p9) target bundleno = 225 (0xe1), region = 66 }
  0x3d   : > { %1745 = dma.done.wait (%p1669_p8), [#allocation3], 32  }
  0x3e   : > { %1747 = vsyncadd (%p1669_p8), [#allocation3], 4294967264  ;;  %s318_s8 = sand.u32 1, %s1750_s12  }
  0x3f   : > { %s1659_s9 = smul.u32 240, %s318_s8 }
  0x41   : > { %s1914_s10 = scalar_lea.vmem [#allocation4], %s1659_s9 }
  0x42   : > { %324 = sfence }
  0x43   : > { %s1660_s11 = smul.u32 1040, %s318_s8  ;;  %v1917_v30 = vld [vmem:[%s1914_s10] sm:$0xff]  ;;  %v1920_v31 = vld [vmem:[%s1914_s10 + $0x50] sm:$0xff]  ;;  %v1932_v36 = vld [vmem:[%s1914_s10 + $0x8] sm:$0xff]  ;;  %v1761_v45 = vmov 1.0   ;;  %s2056_s20 = sld [smem:[#allocation2 + $0x1]] }
  0x44   : > { %v1923_v32 = vld [vmem:[%s1914_s10 + $0xa0] sm:$0xff]  ;;  %v386_v33 = vmul.f32 %v1917_v30, %v1917_v30  ;;  %v396_v34 = vmul.f32 %v1920_v31, %v1920_v31  ;;  %v1935_v37 = vld [vmem:[%s1914_s10 + $0x58] sm:$0xff]  ;;  %v1938_v38 = vld [vmem:[%s1914_s10 + $0xa8] sm:$0xff]  ;;  %s347_s12 = smul.u32 10, %s1798_s15  ;;  %v387_v39 = vmul.f32 %v1932_v36, %v1932_v36  ;;  %s2064_s22 = sld [smem:[#allocation2 + $0x81]] }
  0x45   : > { %v416_v35 = vmul.f32 %v1923_v32, %v1923_v32  ;;  %v397_v40 = vmul.f32 %v1935_v37, %v1935_v37  ;;  %v417_v41 = vmul.f32 %v1938_v38, %v1938_v38  ;;  %v1948_v42 = vld [vmem:[%s1914_s10 + $0x10] sm:$0xff]  ;;  %v1951_v43 = vld [vmem:[%s1914_s10 + $0x60] sm:$0xff]  ;;  %s1956_s14 = scalar_lea.vmem [#allocation5], %s1660_s11  ;;  %v1985_v50 = vld [vmem:[%s1914_s10 + $0x18] sm:$0xff]  ;;  %s2497_s26 = sld [smem:[#allocation2 + $0x2]] }
  0x46   : > { %v1954_v44 = vld [vmem:[%s1914_s10 + $0xb0] sm:$0xff]  ;;  %486 = vst [vmem:[%s1956_s14] sm:$0xff] %v1761_v45  ;;  %487 = vst [vmem:[%s1956_s14 + $0x8] sm:$0xff] %v1761_v45  ;;  %v406_v46 = vadd.f32 %v396_v34, %v386_v33  ;;  %v388_v47 = vmul.f32 %v1948_v42, %v1948_v42  ;;  %v398_v48 = vmul.f32 %v1951_v43, %v1951_v43  ;;  %v1988_v51 = vld [vmem:[%s1914_s10 + $0x68] sm:$0xff]  ;;  %p1995_p4 = scmp.lt.s32.totalorder %s347_s12, 19  ;;  %s2512_s27 = sld [smem:[#allocation2 + $0x82]] }
  0x47   : > { %488 = vst [vmem:[%s1956_s14 + $0x10] sm:$0xff] %v1761_v45  ;;  %489 = vst [vmem:[%s1956_s14 + $0x18] sm:$0xff] %v1761_v45  ;;  %v418_v49 = vmul.f32 %v1954_v44, %v1954_v44  ;;  %v1991_v52 = vld [vmem:[%s1914_s10 + $0xb8] sm:$0xff]  ;;  %v407_v53 = vadd.f32 %v397_v40, %v387_v39  ;;  %v389_v54 = vmul.f32 %v1985_v50, %v1985_v50  ;;  %v2006_v57 = vld [vmem:[%s1914_s10 + $0x20] sm:$0xff]  ;;  %s2514_s28 = sld [smem:[#allocation2 + $0x3]]  ;;  %p2955_p5 = scmp.ne.s32.totalorder %s2952_s21, 0 }
  0x48   : > { %490 = vst [vmem:[%s1956_s14 + $0x20] sm:$0xff] %v1761_v45  ;;  %491 = vst [vmem:[%s1956_s14 + $0x28] sm:$0xff] %v1761_v45  ;;  %v399_v55 = vmul.f32 %v1988_v51, %v1988_v51  ;;  %v419_v56 = vmul.f32 %v1991_v52, %v1991_v52  ;;  %v2009_v58 = vld [vmem:[%s1914_s10 + $0x70] sm:$0xff]  ;;  %v2012_v59 = vld [vmem:[%s1914_s10 + $0xc0] sm:$0xff]  ;;  %v426_v60 = vadd.f32 %v416_v35, %v406_v46  ;;  %s2960_s12 = smov (!%p1995_p4, %s347_s12), 19  ;;  %s2531_s29 = sld [smem:[#allocation2 + $0x83]] }
  0x49   : > { %492 = vst [vmem:[%s1956_s14 + $0x30] sm:$0xff] %v1761_v45  ;;  %493 = vst [vmem:[%s1956_s14 + $0x38] sm:$0xff] %v1761_v45  ;;  %v408_v61 = vadd.f32 %v398_v48, %v388_v47  ;;  %v390_v62 = vmul.f32 %v2006_v57, %v2006_v57  ;;  %v400_v63 = vmul.f32 %v2009_v58, %v2009_v58  ;;  %v2019_v0 = vld [vmem:[%s1914_s10 + $0x28] sm:$0xff]  ;;  %v2022_v1 = vld [vmem:[%s1914_s10 + $0x78] sm:$0xff]  ;;  %s1506_s18 = sshll.u32 %s2960_s12, 3  ;;  %s1657_s30 = smul.u32 (%p2955_p5), 80, %s1798_s15 }
  0x4a   : > { %494 = vst [vmem:[%s1956_s14 + $0x40] sm:$0xff] %v1761_v45  ;;  %495 = vst [vmem:[%s1956_s14 + $0x48] sm:$0xff] %v1761_v45  ;;  %v2025_v2 = vld [vmem:[%s1914_s10 + $0xc8] sm:$0xff]  ;;  %v427_v3 = vadd.f32 %v417_v41, %v407_v53  ;;  %v409_v4 = vadd.f32 %v399_v55, %v389_v54  ;;  %v420_v5 = vmul.f32 %v2012_v59, %v2012_v59  ;;  %v2038_v7 = vld [vmem:[%s1914_s10 + $0x30] sm:$0xff]  ;;  %v436_v8 = vmax.f32 %v426_v60, 1e-24  ;;  %s2079_s25 = scalar_lea.vmem %s2949_s2, %s1506_s18 }
  0x4b   : > { %1607 = vst [vmem:[%s1956_s14 + $0x2d0] sm:$0xff] %v1761_v45  ;;  %1608 = vst [vmem:[%s1956_s14 + $0x2d8] sm:$0xff] %v1761_v45  ;;  %v391_v6 = vmul.f32 %v2019_v0, %v2019_v0  ;;  %v428_v9 = vadd.f32 %v418_v49, %v408_v61  ;;  %v410_v10 = vadd.f32 %v400_v63, %v390_v62  ;;  %v2043_v12 = vld [vmem:[%s1914_s10 + $0x80] sm:$0xff]  ;;  %v2046_v13 = vld [vmem:[%s1914_s10 + $0xd0] sm:$0xff]  ;;  %s2681_s5 = scalar_lea.vmem (%p2955_p5), %s2950_s3, %s1657_s30 }
  0x4c   : > { %1609 = vst [vmem:[%s1956_s14 + $0x2e0] sm:$0xff] %v1761_v45  ;;  %1610 = vst [vmem:[%s1956_s14 + $0x2e8] sm:$0xff] %v1761_v45  ;;  %v401_v11 = vmul.f32 %v2022_v1, %v2022_v1  ;;  %v437_v14 = vmax.f32 %v427_v3, 1e-24  ;;  %v429_v15 = vadd.f32 %v419_v56, %v409_v4  ;;  %v421_v16 = vmul.f32 %v2025_v2, %v2025_v2  ;;  %v2054_v18 = vld [vmem:[%s1914_s10 + $0x38] sm:$0xff]  ;;  %v2059_v22 = vld [vmem:[%s1914_s10 + $0x88] sm:$0xff] }
  0x4d   : > { %1611 = vst [vmem:[%s1956_s14 + $0x2f0] sm:$0xff] %v1761_v45  ;;  %1612 = vst [vmem:[%s1956_s14 + $0x2f8] sm:$0xff] %v1761_v45  ;;  %v392_v17 = vmul.f32 %v2038_v7, %v2038_v7  ;;  %1697 = vrsqrt.f32 %v436_v8  ;;  %v438_v19 = vmax.f32 %v428_v9, 1e-24  ;;  %v430_v20 = vadd.f32 %v420_v5, %v410_v10  ;;  %v2062_v23 = vld [vmem:[%s1914_s10 + $0xd8] sm:$0xff]  ;;  %v2071_v27 = vld [vmem:[%s1914_s10 + $0x40] sm:$0xff] }
  0x4e   : > { %1613 = vst [vmem:[%s1956_s14 + $0x300] sm:$0xff] %v1761_v45  ;;  %1614 = vst [vmem:[%s1956_s14 + $0x308] sm:$0xff] %v1761_v45  ;;  %v411_v21 = vadd.f32 %v401_v11, %v391_v6  ;;  %1699 = vrsqrt.f32 %v437_v14  ;;  %v439_v24 = vmax.f32 %v429_v15, 1e-24  ;;  %v402_v25 = vmul.f32 %v2043_v12, %v2043_v12  ;;  %v2074_v28 = vld [vmem:[%s1914_s10 + $0x90] sm:$0xff]  ;;  %v2084_v35 = vld [vmem:[%s1914_s10 + $0xe0] sm:$0xff] }
  0x4f   : > { %1615 = vst [vmem:[%s1956_s14 + $0x310] sm:$0xff] %v1761_v45  ;;  %1616 = vst [vmem:[%s1956_s14 + $0x318] sm:$0xff] %v1761_v45  ;;  %v422_v26 = vmul.f32 %v2046_v13, %v2046_v13  ;;  %1701 = vrsqrt.f32 %v438_v19  ;;  %v440_v29 = vmax.f32 %v430_v20, 1e-24  ;;  %v393_v34 = vmul.f32 %v2054_v18, %v2054_v18  ;;  %v2087_v39 = vld [vmem:[%s1914_s10 + $0x48] sm:$0xff]  ;;  %v2094_v46 = vld [vmem:[%s1914_s10 + $0x98] sm:$0xff] }
  0x50   : > { %v431_v33 = vadd.f32 %v421_v16, %v411_v21  ;;  %1703 = vrsqrt.f32 %v439_v24  ;;  %v412_v40 = vadd.f32 %v402_v25, %v392_v17  ;;  %v403_v41 = vmul.f32 %v2059_v22, %v2059_v22  ;;  %v2097_v47 = vld [vmem:[%s1914_s10 + $0xe8] sm:$0xff]  ;;  %v2104_v54 = vld [vmem:[%s2079_s25] sm:$0xff] }
  0x51   : > { %v423_v45 = vmul.f32 %v2062_v23, %v2062_v23  ;;  %1705 = vrsqrt.f32 %v440_v29  ;;  %v394_v49 = vmul.f32 %v2071_v27, %v2071_v27  ;;  %v404_v53 = vmul.f32 %v2074_v28, %v2074_v28  ;;  %v2111_v62 = vld [vmem:[%s2079_s25 + $0x8] sm:$0xff] }
  0x52   : > { %v441_v48 = vmax.f32 %v431_v33, 1e-24  ;;  %v432_v55 = vadd.f32 %v422_v26, %v412_v40  ;;  %v413_v56 = vadd.f32 %v403_v41, %v393_v34  ;;  %v424_v60 = vmul.f32 %v2084_v35, %v2084_v35 }
  0x53   : > { %v395_v61 = vmul.f32 %v2087_v39, %v2087_v39  ;;  %v414_v63 = vadd.f32 %v404_v53, %v394_v49  ;;  %v405_v3 = vmul.f32 %v2094_v46, %v2094_v46  ;;  %v425_v4 = vmul.f32 %v2097_v47, %v2097_v47 }
  0x54   : > { %1707 = vrsqrt.f32 %v441_v48  ;;  %v442_v5 = vmax.f32 %v432_v55, 1e-24  ;;  %v433_v6 = vadd.f32 %v423_v45, %v413_v56  ;;  %v2118_v8 = vstv %s2056_s20 }
  0x55   : > { %vm781_vm0 = vcmp.eq.s32.totalorder %v2104_v54, 1  ;;  %v434_v9 = vadd.f32 %v424_v60, %v414_v63  ;;  %v415_v10 = vadd.f32 %v405_v3, %v395_v61  ;;  %v2122_v11 = vstv %s2064_s22 }
  0x56   : > { %vm782_vm1 = vcmp.eq.s32.totalorder %v2111_v62, 1  ;;  %1709 = vrsqrt.f32 %v442_v5  ;;  %v443_v14 = vmax.f32 %v433_v6, 1e-24  ;;  %v793_v15 = vsel %vm781_vm0, %v2122_v11, %v2118_v8 }
  0x57   : > { %v794_v16 = vsel %vm782_vm1, %v2122_v11, %v2118_v8  ;;  %v1698_v17 = vpop.eup %1697  ;;  %v444_v19 = vmax.f32 %v434_v9, 1e-24  ;;  %v435_v20 = vadd.f32 %v425_v4, %v415_v10  ;;  %1623 = vst [vmem:[%s1956_s14 + $0x320] sm:$0xff] %v793_v15 }
  0x58   : > { %1624 = vst [vmem:[%s1956_s14 + $0x328] sm:$0xff] %v794_v16  ;;  %v1700_v21 = vpop.eup %1699  ;;  %v2136_v24 = vmul.f32 %v1698_v17, %v1917_v30  ;;  %1711 = vrsqrt.f32 %v443_v14  ;;  %v2139_v25 = vmul.f32 %v1698_v17, %v1920_v31  ;;  %v2142_v26 = vmul.f32 %v1698_v17, %v1923_v32 }
  0x59   : > { %v1702_v29 = vpop.eup %1701  ;;  %v2145_v33 = vmul.f32 %v1700_v21, %v1932_v36  ;;  %1713 = vrsqrt.f32 %v444_v19  ;;  %v445_v34 = vmax.f32 %v435_v20, 1e-24  ;;  %v2148_v40 = vmul.f32 %v1700_v21, %v1935_v37 }
  0x5a   : > { %v1704_v30 = vpop.eup %1703  ;;  %v496_v41 = vmul.f32 1.7320508, %v2136_v24  ;;  %v2152_v31 = vmul.f32 %v1702_v29, %v1948_v42  ;;  %v517_v32 = vmul.f32 1.7320508, %v2139_v25  ;;  %v2156_v45 = vmul.f32 %v1702_v29, %v1951_v43 }
  0x5b   : > { %v1706_v36 = vpop.eup %1705  ;;  %v497_v48 = vmul.f32 1.7320508, %v2145_v33  ;;  %v2160_v49 = vmul.f32 %v1704_v30, %v1985_v50  ;;  %1715 = vrsqrt.f32 %v445_v34  ;;  %v518_v37 = vmul.f32 1.7320508, %v2148_v40 }
  0x5c   : > { %1527 = vst [vmem:[%s1956_s14 + $0x50] sm:$0xff] %v496_v41  ;;  %v498_v42 = vmul.f32 1.7320508, %v2152_v31  ;;  %v2166_v53 = vmul.f32 %v1706_v36, %v2006_v57  ;;  %1537 = vst [vmem:[%s1956_s14 + $0xa0] sm:$0xff] %v517_v32  ;;  %v519_v43 = vmul.f32 1.7320508, %v2156_v45  ;;  %v2171_v55 = vmul.f32 %v1704_v30, %v1988_v51 }
  0x5d   : > { %1528 = vst [vmem:[%s1956_s14 + $0x58] sm:$0xff] %v497_v48  ;;  %v499_v56 = vmul.f32 1.7320508, %v2160_v49  ;;  %1538 = vst [vmem:[%s1956_s14 + $0xa8] sm:$0xff] %v518_v37  ;;  %v2177_v60 = vmul.f32 %v1706_v36, %v2009_v58  ;;  %v538_v57 = vmul.f32 1.7320508, %v2142_v26  ;;  %v2181_v61 = vmul.f32 %v1700_v21, %v1938_v38 }
  0x5e   : > { %v1708_v50 = vpop.eup %1707  ;;  %1529 = vst [vmem:[%s1956_s14 + $0x60] sm:$0xff] %v498_v42  ;;  %v500_v51 = vmul.f32 1.7320508, %v2166_v53  ;;  %1539 = vst [vmem:[%s1956_s14 + $0xb0] sm:$0xff] %v519_v43  ;;  %v520_v3 = vmul.f32 1.7320508, %v2171_v55  ;;  %v2198_v5 = vmul.f32 %v1702_v29, %v1954_v44  ;;  %v2208_v10 = vmul.f32 %v1706_v36, %v2012_v59 }
  0x5f   : > { %v2186_v63 = vmul.f32 %v1708_v50, %v2019_v0  ;;  %v2191_v58 = vmul.f32 %v1708_v50, %v2022_v1  ;;  %1530 = vst [vmem:[%s1956_s14 + $0x68] sm:$0xff] %v499_v56  ;;  %v521_v4 = vmul.f32 1.7320508, %v2177_v60  ;;  %1547 = vst [vmem:[%s1956_s14 + $0xf0] sm:$0xff] %v538_v57  ;;  %v539_v38 = vmul.f32 1.7320508, %v2181_v61 }
  0x60   : > { %v2201_v0 = vmul.f32 %v1704_v30, %v1991_v52  ;;  %v1710_v6 = vpop.eup %1709  ;;  %1531 = vst [vmem:[%s1956_s14 + $0x70] sm:$0xff] %v500_v51  ;;  %1540 = vst [vmem:[%s1956_s14 + $0xb8] sm:$0xff] %v520_v3  ;;  %v2211_v14 = vmul.f32 %v1708_v50, %v2025_v2  ;;  %v540_v15 = vmul.f32 1.7320508, %v2198_v5  ;;  %v542_v59 = vmul.f32 1.7320508, %v2208_v10 }
  0x61   : > { %v501_v1 = vmul.f32 1.7320508, %v2186_v63  ;;  %v522_v9 = vmul.f32 1.7320508, %v2191_v58  ;;  %v2214_v44 = vmul.f32 %v1710_v6, %v2038_v7  ;;  %1541 = vst [vmem:[%s1956_s14 + $0xc0] sm:$0xff] %v521_v4  ;;  %v2218_v52 = vmul.f32 %v1710_v6, %v2043_v12  ;;  %1548 = vst [vmem:[%s1956_s14 + $0xf8] sm:$0xff] %v539_v38 }
  0x62   : > { %v541_v16 = vmul.f32 1.7320508, %v2201_v0  ;;  %v1712_v17 = vpop.eup %1711  ;;  %v543_v2 = vmul.f32 1.7320508, %v2211_v14  ;;  %v2228_v7 = vmul.f32 %v1710_v6, %v2046_v13  ;;  %v559_v12 = vmul.f32 3.8729835, %v2136_v24 }
  0x63   : > { %1532 = vst [vmem:[%s1956_s14 + $0x78] sm:$0xff] %v501_v1  ;;  %1542 = vst [vmem:[%s1956_s14 + $0xc8] sm:$0xff] %v522_v9  ;;  %v1714_v19 = vpop.eup %1713  ;;  %v502_v20 = vmul.f32 1.7320508, %v2214_v44  ;;  %v2233_v21 = vmul.f32 %v1712_v17, %v2054_v18  ;;  %v523_v29 = vmul.f32 1.7320508, %v2218_v52  ;;  %v2237_v34 = vmul.f32 %v1712_v17, %v2059_v22 }
  0x64   : > { %1549 = vst [vmem:[%s1956_s14 + $0x100] sm:$0xff] %v540_v15  ;;  %1550 = vst [vmem:[%s1956_s14 + $0x108] sm:$0xff] %v541_v16  ;;  %v2242_v13 = vmul.f32 %v1714_v19, %v2071_v27  ;;  %v2245_v30 = vmul.f32 %v1714_v19, %v2074_v28  ;;  %v544_v18 = vmul.f32 1.7320508, %v2228_v7  ;;  %v2251_v41 = vmul.f32 %v1712_v17, %v2062_v23 }
  0x65   : > { %1551 = vst [vmem:[%s1956_s14 + $0x110] sm:$0xff] %v542_v59  ;;  %1552 = vst [vmem:[%s1956_s14 + $0x118] sm:$0xff] %v543_v2  ;;  %v1716_v22 = vpop.eup %1715  ;;  %v503_v32 = vmul.f32 1.7320508, %v2233_v21  ;;  %v524_v27 = vmul.f32 1.7320508, %v2237_v34  ;;  %v2258_v28 = vmul.f32 %v1714_v19, %v2084_v35  ;;  %v569_v36 = vmul.f32 %v559_v12, %v2142_v26 }
  0x66   : > { %1533 = vst [vmem:[%s1956_s14 + $0x80] sm:$0xff] %v502_v20  ;;  %1543 = vst [vmem:[%s1956_s14 + $0xd0] sm:$0xff] %v523_v29  ;;  %v504_v48 = vmul.f32 1.7320508, %v2242_v13  ;;  %v2263_v23 = vmul.f32 %v1716_v22, %v2087_v39  ;;  %v525_v37 = vmul.f32 1.7320508, %v2245_v30  ;;  %v2267_v42 = vmul.f32 %v1716_v22, %v2094_v46 }
  0x67   : > { %1553 = vst [vmem:[%s1956_s14 + $0x120] sm:$0xff] %v544_v18  ;;  %1534 = vst [vmem:[%s1956_s14 + $0x88] sm:$0xff] %v503_v32  ;;  %v545_v35 = vmul.f32 1.7320508, %v2251_v41  ;;  %v546_v43 = vmul.f32 1.7320508, %v2258_v28  ;;  %v2275_v50 = vmul.f32 %v1716_v22, %v2097_v47  ;;  %v590_v51 = vmul.f32 %v559_v12, %v2139_v25 }
  0x68   : > { %1544 = vst [vmem:[%s1956_s14 + $0xd8] sm:$0xff] %v524_v27  ;;  %1557 = vst [vmem:[%s1956_s14 + $0x140] sm:$0xff] %v569_v36  ;;  %v560_v39 = vmul.f32 3.8729835, %v2145_v33  ;;  %v505_v46 = vmul.f32 1.7320508, %v2263_v23 }
  0x69   : > { %1535 = vst [vmem:[%s1956_s14 + $0x90] sm:$0xff] %v504_v48  ;;  %1545 = vst [vmem:[%s1956_s14 + $0xe0] sm:$0xff] %v525_v37  ;;  %v526_v56 = vmul.f32 1.7320508, %v2267_v42  ;;  %v561_v57 = vmul.f32 3.8729835, %v2152_v31 }
  0x6a   : > { %1554 = vst [vmem:[%s1956_s14 + $0x128] sm:$0xff] %v545_v35  ;;  %1555 = vst [vmem:[%s1956_s14 + $0x130] sm:$0xff] %v546_v43  ;;  %v547_v47 = vmul.f32 1.7320508, %v2275_v50  ;;  %v570_v3 = vmul.f32 %v560_v39, %v2181_v61  ;;  %v562_v4 = vmul.f32 3.8729835, %v2160_v49  ;;  %v591_v29 = vmul.f32 %v560_v39, %v2148_v40 }
  0x6b   : > { %v563_v38 = vmul.f32 3.8729835, %v2166_v53  ;;  %1536 = vst [vmem:[%s1956_s14 + $0x98] sm:$0xff] %v505_v46  ;;  %1546 = vst [vmem:[%s1956_s14 + $0xe8] sm:$0xff] %v526_v56  ;;  %v571_v6 = vmul.f32 %v561_v57, %v2198_v5  ;;  %v564_v1 = vmul.f32 3.8729835, %v2186_v63  ;;  %v592_v32 = vmul.f32 %v561_v57, %v2156_v45 }
  0x6c   : > { %v565_v9 = vmul.f32 3.8729835, %v2214_v44  ;;  %v566_v15 = vmul.f32 3.8729835, %v2233_v21  ;;  %1567 = vst [vmem:[%s1956_s14 + $0x190] sm:$0xff] %v590_v51  ;;  %1556 = vst [vmem:[%s1956_s14 + $0x138] sm:$0xff] %v547_v47  ;;  %v572_v16 = vmul.f32 %v562_v4, %v2201_v0  ;;  %v593_v27 = vmul.f32 %v562_v4, %v2171_v55 }
  0x6d   : > { %1558 = vst [vmem:[%s1956_s14 + $0x148] sm:$0xff] %v570_v3  ;;  %v573_v17 = vmul.f32 %v563_v38, %v2208_v10  ;;  %v567_v59 = vmul.f32 3.8729835, %v2242_v13  ;;  %v568_v2 = vmul.f32 3.8729835, %v2263_v23  ;;  %1559 = vst [vmem:[%s1956_s14 + $0x150] sm:$0xff] %v571_v6  ;;  %v574_v12 = vmul.f32 %v564_v1, %v2211_v14 }
  0x6e   : > { %v575_v19 = vmul.f32 %v565_v9, %v2228_v7  ;;  %v576_v20 = vmul.f32 %v566_v15, %v2251_v41  ;;  %1560 = vst [vmem:[%s1956_s14 + $0x158] sm:$0xff] %v572_v16  ;;  %1568 = vst [vmem:[%s1956_s14 + $0x198] sm:$0xff] %v591_v29  ;;  %v594_v36 = vmul.f32 %v563_v38, %v2177_v60 }
  0x6f   : > { %1561 = vst [vmem:[%s1956_s14 + $0x160] sm:$0xff] %v573_v17  ;;  %v577_v18 = vmul.f32 %v567_v59, %v2258_v28  ;;  %v578_v22 = vmul.f32 %v568_v2, %v2275_v50  ;;  %1562 = vst [vmem:[%s1956_s14 + $0x168] sm:$0xff] %v574_v12  ;;  %v595_v48 = vmul.f32 %v564_v1, %v2191_v58 }
  0x70   : > { %1563 = vst [vmem:[%s1956_s14 + $0x170] sm:$0xff] %v575_v19  ;;  %1564 = vst [vmem:[%s1956_s14 + $0x178] sm:$0xff] %v576_v20  ;;  %v596_v37 = vmul.f32 %v565_v9, %v2218_v52  ;;  %v597_v35 = vmul.f32 %v566_v15, %v2237_v34  ;;  %v598_v43 = vmul.f32 %v567_v59, %v2245_v30 }
  0x71   : > { %1565 = vst [vmem:[%s1956_s14 + $0x180] sm:$0xff] %v577_v18  ;;  %1566 = vst [vmem:[%s1956_s14 + $0x188] sm:$0xff] %v578_v22  ;;  %v599_v39 = vmul.f32 %v568_v2, %v2267_v42  ;;  %v611_v46 = vmul.f32 %v2139_v25, %v2139_v25  ;;  %v2333_v56 = vmul.f32 %v2136_v24, %v2136_v24 }
  0x72   : > { %1569 = vst [vmem:[%s1956_s14 + $0x1a0] sm:$0xff] %v592_v32  ;;  %1570 = vst [vmem:[%s1956_s14 + $0x1a8] sm:$0xff] %v593_v27  ;;  %v2341_v57 = vmul.f32 %v2142_v26, %v2142_v26  ;;  %v612_v51 = vmul.f32 %v2148_v40, %v2148_v40  ;;  %v2347_v47 = vmul.f32 %v2145_v33, %v2145_v33 }
  0x73   : > { %1571 = vst [vmem:[%s1956_s14 + $0x1b0] sm:$0xff] %v594_v36  ;;  %1572 = vst [vmem:[%s1956_s14 + $0x1b8] sm:$0xff] %v595_v48  ;;  %v2351_v3 = vmul.f32 %v2181_v61, %v2181_v61  ;;  %v613_v24 = vmul.f32 %v2156_v45, %v2156_v45  ;;  %v2359_v4 = vmul.f32 %v2152_v31, %v2152_v31 }
  0x74   : > { %1573 = vst [vmem:[%s1956_s14 + $0x1c0] sm:$0xff] %v596_v37  ;;  %1574 = vst [vmem:[%s1956_s14 + $0x1c8] sm:$0xff] %v597_v35  ;;  %v2363_v38 = vmul.f32 %v2198_v5, %v2198_v5  ;;  %v614_v33 = vmul.f32 %v2171_v55, %v2171_v55  ;;  %v641_v6 = vadd.f32 %v2341_v57, %v2333_v56 }
  0x75   : > { %1575 = vst [vmem:[%s1956_s14 + $0x1d0] sm:$0xff] %v598_v43  ;;  %1576 = vst [vmem:[%s1956_s14 + $0x1d8] sm:$0xff] %v599_v39  ;;  %v642_v1 = vadd.f32 %v2351_v3, %v2347_v47  ;;  %v2373_v9 = vmul.f32 %v2160_v49, %v2160_v49  ;;  %v2377_v31 = vmul.f32 %v2201_v0, %v2201_v0 }
  0x76   : > { %v643_v15 = vadd.f32 %v2363_v38, %v2359_v4  ;;  %v615_v16 = vmul.f32 %v2177_v60, %v2177_v60  ;;  %v2385_v17 = vmul.f32 %v2166_v53, %v2166_v53  ;;  %v2389_v59 = vmul.f32 %v2208_v10, %v2208_v10 }
  0x77   : > { %v651_v49 = vmul.f32 0.5, %v641_v6  ;;  %v652_v2 = vmul.f32 0.5, %v642_v1  ;;  %v644_v12 = vadd.f32 %v2377_v31, %v2373_v9  ;;  %v616_v19 = vmul.f32 %v2191_v58, %v2191_v58 }
  0x78   : > { %v653_v20 = vmul.f32 0.5, %v643_v15  ;;  %v645_v29 = vadd.f32 %v2389_v59, %v2385_v17  ;;  %v2399_v53 = vmul.f32 %v2186_v63, %v2186_v63  ;;  %v2403_v18 = vmul.f32 %v2211_v14, %v2211_v14 }
  0x79   : > { %v661_v22 = vsub.f32 %v611_v46, %v651_v49  ;;  %v662_v32 = vsub.f32 %v612_v51, %v652_v2  ;;  %v654_v27 = vmul.f32 0.5, %v644_v12  ;;  %v617_v36 = vmul.f32 %v2218_v52, %v2218_v52 }
  0x7a   : > { %v663_v48 = vsub.f32 %v613_v24, %v653_v20  ;;  %v655_v37 = vmul.f32 0.5, %v645_v29  ;;  %v646_v35 = vadd.f32 %v2403_v18, %v2399_v53  ;;  %v2411_v63 = vmul.f32 %v2214_v44, %v2214_v44 }
  0x7b   : > { %v671_v43 = vmul.f32 2.236068, %v661_v22  ;;  %v672_v39 = vmul.f32 2.236068, %v662_v32  ;;  %v664_v46 = vsub.f32 %v614_v33, %v654_v27  ;;  %v2415_v51 = vmul.f32 %v2228_v7, %v2228_v7  ;;  %v2448_v27 = vld [vmem:[%s2079_s25 + $0x10] sm:$0xff] }
  0x7c   : > { %v673_v6 = vmul.f32 2.236068, %v663_v48  ;;  %v665_v1 = vsub.f32 %v615_v16, %v655_v37  ;;  %v656_v24 = vmul.f32 0.5, %v646_v35  ;;  %v618_v15 = vmul.f32 %v2237_v34, %v2237_v34  ;;  %v2451_v48 = vld [vmem:[%s2079_s25 + $0x18] sm:$0xff] }
  0x7d   : > { %1577 = vst [vmem:[%s1956_s14 + $0x1e0] sm:$0xff] %v671_v43  ;;  %1578 = vst [vmem:[%s1956_s14 + $0x1e8] sm:$0xff] %v672_v39  ;;  %v674_v44 = vmul.f32 2.236068, %v664_v46  ;;  %v647_v33 = vadd.f32 %v2415_v51, %v2411_v63  ;;  %v2425_v49 = vmul.f32 %v2233_v21, %v2233_v21  ;;  %v2429_v16 = vmul.f32 %v2251_v41, %v2251_v41 }
  0x7e   : > { %1579 = vst [vmem:[%s1956_s14 + $0x1f0] sm:$0xff] %v673_v6  ;;  %v675_v2 = vmul.f32 2.236068, %v665_v1  ;;  %v666_v12 = vsub.f32 %v616_v19, %v656_v24  ;;  %v619_v20 = vmul.f32 %v2245_v30, %v2245_v30  ;;  %v2436_v29 = vmul.f32 %v2242_v13, %v2242_v13 }
  0x7f   : > { %1580 = vst [vmem:[%s1956_s14 + $0x1f8] sm:$0xff] %v674_v44  ;;  %v657_v22 = vmul.f32 0.5, %v647_v33  ;;  %v648_v21 = vadd.f32 %v2429_v16, %v2425_v49  ;;  %v2443_v32 = vmul.f32 %v2258_v28, %v2258_v28  ;;  %v620_v19 = vmul.f32 %v2267_v42, %v2267_v42 }
  0x80   : > { %1581 = vst [vmem:[%s1956_s14 + $0x200] sm:$0xff] %v675_v2  ;;  %v676_v13 = vmul.f32 2.236068, %v666_v12  ;;  %v2456_v37 = vmul.f32 %v2263_v23, %v2263_v23  ;;  %v2460_v35 = vmul.f32 %v2275_v50, %v2275_v50  ;;  %v692_v43 = vmul.f32 3.8729835, %v2139_v25 }
  0x81   : > { %v667_v39 = vsub.f32 %v617_v36, %v657_v22  ;;  %v658_v46 = vmul.f32 0.5, %v648_v21  ;;  %v649_v6 = vadd.f32 %v2443_v32, %v2436_v29  ;;  %v693_v1 = vmul.f32 3.8729835, %v2148_v40 }
  0x82   : > { %1582 = vst [vmem:[%s1956_s14 + $0x208] sm:$0xff] %v676_v13  ;;  %v650_v23 = vadd.f32 %v2460_v35, %v2456_v37  ;;  %v702_v24 = vmul.f32 %v692_v43, %v2142_v26  ;;  %v694_v44 = vmul.f32 3.8729835, %v2156_v45  ;;  %v695_v25 = vmul.f32 3.8729835, %v2171_v55 }
  0x83   : > { %vm783_vm2 = vcmp.eq.s32.totalorder %v2448_v27, 1  ;;  %vm784_vm3 = vcmp.eq.s32.totalorder %v2451_v48, 1  ;;  %v677_v36 = vmul.f32 2.236068, %v667_v39  ;;  %v668_v33 = vsub.f32 %v618_v15, %v658_v46  ;;  %v2559_v46 = vld [vmem:[%s2079_s25 + $0x48] sm:$0xff] }
  0x84   : > { %v659_v40 = vmul.f32 0.5, %v649_v6  ;;  %v703_v2 = vmul.f32 %v693_v1, %v2181_v61  ;;  %v660_v12 = vmul.f32 0.5, %v650_v23  ;;  %1587 = vst [vmem:[%s1956_s14 + $0x230] sm:$0xff] %v702_v24  ;;  %v704_v26 = vmul.f32 %v694_v44, %v2198_v5 }
  0x85   : > { %v705_v45 = vmul.f32 %v695_v25, %v2201_v0  ;;  %v696_v55 = vmul.f32 3.8729835, %v2177_v60  ;;  %1583 = vst [vmem:[%s1956_s14 + $0x210] sm:$0xff] %v677_v36  ;;  %v678_v22 = vmul.f32 2.236068, %v668_v33  ;;  %v796_v39 = vsel %vm784_vm3, %v2122_v11, %v2118_v8 }
  0x86   : > { %v669_v21 = vsub.f32 %v619_v20, %v659_v40  ;;  %1588 = vst [vmem:[%s1956_s14 + $0x238] sm:$0xff] %v703_v2  ;;  %v697_v15 = vmul.f32 3.8729835, %v2191_v58  ;;  %v698_v13 = vmul.f32 3.8729835, %v2218_v52  ;;  %v670_v43 = vsub.f32 %v620_v19, %v660_v12  ;;  %1589 = vst [vmem:[%s1956_s14 + $0x240] sm:$0xff] %v704_v26 }
  0x87   : > { %1590 = vst [vmem:[%s1956_s14 + $0x248] sm:$0xff] %v705_v45  ;;  %v706_v61 = vmul.f32 %v696_v55, %v2208_v10  ;;  %v699_v5 = vmul.f32 3.8729835, %v2237_v34  ;;  %v700_v60 = vmul.f32 3.8729835, %v2245_v30  ;;  %1584 = vst [vmem:[%s1956_s14 + $0x218] sm:$0xff] %v678_v22  ;;  %v723_v30 = vsub.f32 %v2341_v57, %v2333_v56 }
  0x88   : > { %v679_v0 = vmul.f32 2.236068, %v669_v21  ;;  %v707_v20 = vmul.f32 %v697_v15, %v2211_v14  ;;  %v708_v58 = vmul.f32 %v698_v13, %v2228_v7  ;;  %v701_v52 = vmul.f32 3.8729835, %v2267_v42  ;;  %v2510_v42 = vld [vmem:[%s2079_s25 + $0x20] sm:$0xff]  ;;  %1626 = vst [vmem:[%s1956_s14 + $0x338] sm:$0xff] %v796_v39 }
  0x89   : > { %v680_v19 = vmul.f32 2.236068, %v670_v43  ;;  %1591 = vst [vmem:[%s1956_s14 + $0x250] sm:$0xff] %v706_v61  ;;  %v709_v10 = vmul.f32 %v699_v5, %v2251_v41  ;;  %v710_v34 = vmul.f32 %v700_v60, %v2258_v28  ;;  %v724_v7 = vsub.f32 %v2351_v3, %v2347_v47  ;;  %v2526_v3 = vld [vmem:[%s2079_s25 + $0x28] sm:$0xff]  ;;  %v1211_v39 = vld [vmem:[%s1956_s14 + $0xe0] sm:$0xff] (%p2955_p5) }
  0x8a   : > { %1585 = vst [vmem:[%s1956_s14 + $0x220] sm:$0xff] %v679_v0  ;;  %1592 = vst [vmem:[%s1956_s14 + $0x258] sm:$0xff] %v707_v20  ;;  %v711_v14 = vmul.f32 %v701_v52, %v2275_v50  ;;  %v725_v41 = vsub.f32 %v2363_v38, %v2359_v4  ;;  %v726_v28 = vsub.f32 %v2377_v31, %v2373_v9  ;;  %v733_v50 = vmul.f32 1.9364917, %v723_v30  ;;  %v2529_v4 = vld [vmem:[%s2079_s25 + $0x30] sm:$0xff]  ;;  %v1157_v52 = vld [vmem:[%s1956_s14 + $0x8] sm:$0xff] (%p2955_p5) }
  0x8b   : > { %1593 = vst [vmem:[%s1956_s14 + $0x260] sm:$0xff] %v708_v58  ;;  %1586 = vst [vmem:[%s1956_s14 + $0x228] sm:$0xff] %v680_v19  ;;  %v727_v56 = vsub.f32 %v2389_v59, %v2385_v17  ;;  %v728_v57 = vsub.f32 %v2403_v18, %v2399_v53  ;;  %v729_v47 = vsub.f32 %v2415_v51, %v2411_v63  ;;  %v734_v38 = vmul.f32 1.9364917, %v724_v7  ;;  %v1155_v58 = vld [vmem:[%s1956_s14] sm:$0xff] (%p2955_p5)  ;;  %v1159_v19 = vld [vmem:[%s1956_s14 + $0x10] sm:$0xff] (%p2955_p5) }
  0x8c   : > { %1594 = vst [vmem:[%s1956_s14 + $0x268] sm:$0xff] %v709_v10  ;;  %1595 = vst [vmem:[%s1956_s14 + $0x270] sm:$0xff] %v710_v34  ;;  %v735_v9 = vmul.f32 1.9364917, %v725_v41  ;;  %v736_v31 = vmul.f32 1.9364917, %v726_v28  ;;  %v730_v17 = vsub.f32 %v2429_v16, %v2425_v49  ;;  %v731_v63 = vsub.f32 %v2443_v32, %v2436_v29 }
  0x8d   : > { %1596 = vst [vmem:[%s1956_s14 + $0x278] sm:$0xff] %v711_v14  ;;  %1597 = vst [vmem:[%s1956_s14 + $0x280] sm:$0xff] %v733_v50  ;;  %v737_v59 = vmul.f32 1.9364917, %v727_v56  ;;  %v738_v53 = vmul.f32 1.9364917, %v728_v57  ;;  %v732_v49 = vsub.f32 %v2460_v35, %v2456_v37  ;;  %v795_v16 = vsel %vm783_vm2, %v2122_v11, %v2118_v8 }
  0x8e   : > { %v739_v18 = vmul.f32 1.9364917, %v729_v47  ;;  %1598 = vst [vmem:[%s1956_s14 + $0x288] sm:$0xff] %v734_v38  ;;  %1599 = vst [vmem:[%s1956_s14 + $0x290] sm:$0xff] %v735_v9  ;;  %v740_v51 = vmul.f32 1.9364917, %v730_v17  ;;  %v778_v24 = vstv %s2497_s26  ;;  %v804_v33 = vstv %s2512_s27 }
  0x8f   : > { %1600 = vst [vmem:[%s1956_s14 + $0x298] sm:$0xff] %v736_v31  ;;  %v2553_v29 = vld [vmem:[%s2079_s25 + $0x38] sm:$0xff]  ;;  %v2556_v32 = vld [vmem:[%s2079_s25 + $0x40] sm:$0xff]  ;;  %1601 = vst [vmem:[%s1956_s14 + $0x2a0] sm:$0xff] %v737_v59  ;;  %v741_v37 = vmul.f32 1.9364917, %v731_v63  ;;  %v805_v40 = vsel %vm781_vm0, %v804_v33, %v778_v24  ;;  %v806_v2 = vsel %vm782_vm1, %v804_v33, %v778_v24  ;;  %v807_v12 = vsel %vm783_vm2, %v804_v33, %v778_v24 }
  0x90   : > { %1602 = vst [vmem:[%s1956_s14 + $0x2a8] sm:$0xff] %v738_v53  ;;  %1603 = vst [vmem:[%s1956_s14 + $0x2b0] sm:$0xff] %v739_v18  ;;  %vm785_vm4 = vcmp.eq.s32.totalorder %v2510_v42, 1  ;;  %vm786_vm5 = vcmp.eq.s32.totalorder %v2526_v3, 1  ;;  %vm787_vm6 = vcmp.eq.s32.totalorder %v2529_v4, 1  ;;  %vm788_vm7 = vcmp.eq.s32.totalorder %v2553_v29, 1 }
  0x91   : > { %1625 = vst [vmem:[%s1956_s14 + $0x330] sm:$0xff] %v795_v16  ;;  %1604 = vst [vmem:[%s1956_s14 + $0x2b8] sm:$0xff] %v740_v51  ;;  %v742_v35 = vmul.f32 1.9364917, %v732_v49  ;;  %v797_v6 = vsel %vm785_vm4, %v2122_v11, %v2118_v8  ;;  %v798_v1 = vsel %vm786_vm5, %v2122_v11, %v2118_v8  ;;  %v799_v23 = vsel %vm787_vm6, %v2122_v11, %v2118_v8  ;;  %v1161_v10 = vld [vmem:[%s1956_s14 + $0x18] sm:$0xff] (%p2955_p5)  ;;  %v1163_v34 = vld [vmem:[%s1956_s14 + $0x20] sm:$0xff] (%p2955_p5) }
  0x92   : > { %1605 = vst [vmem:[%s1956_s14 + $0x2c0] sm:$0xff] %v741_v37  ;;  %1627 = vst [vmem:[%s1956_s14 + $0x340] sm:$0xff] %v797_v6  ;;  %vm789_vm8 = vcmp.eq.s32.totalorder %v2556_v32, 1  ;;  %vm790_vm9 = vcmp.eq.s32.totalorder %v2559_v46, 1  ;;  %v800_v44 = vsel %vm788_vm7, %v2122_v11, %v2118_v8  ;;  %v810_v26 = vsel %vm786_vm5, %v804_v33, %v778_v24  ;;  %v1165_v30 = vld [vmem:[%s1956_s14 + $0x28] sm:$0xff] (%p2955_p5)  ;;  %v1167_v14 = vld [vmem:[%s1956_s14 + $0x30] sm:$0xff] (%p2955_p5) }
  0x93   : > { %1628 = vst [vmem:[%s1956_s14 + $0x348] sm:$0xff] %v798_v1  ;;  %1629 = vst [vmem:[%s1956_s14 + $0x350] sm:$0xff] %v799_v23  ;;  %v801_v25 = vsel %vm789_vm8, %v2122_v11, %v2118_v8  ;;  %v802_v36 = vsel %vm790_vm9, %v2122_v11, %v2118_v8  ;;  %v808_v8 = vsel %vm784_vm3, %v804_v33, %v778_v24  ;;  %v780_v15 = vstv %s2514_s28  ;;  %v1169_v7 = vld [vmem:[%s1956_s14 + $0x38] sm:$0xff] (%p2955_p5) }
  0x94   : > { %1606 = vst [vmem:[%s1956_s14 + $0x2c8] sm:$0xff] %v742_v35  ;;  %1630 = vst [vmem:[%s1956_s14 + $0x358] sm:$0xff] %v800_v44  ;;  %v809_v11 = vsel %vm785_vm4, %v804_v33, %v778_v24  ;;  %v811_v45 = vsel %vm787_vm6, %v804_v33, %v778_v24  ;;  %v812_v55 = vsel %vm788_vm7, %v804_v33, %v778_v24  ;;  %v816_v13 = vstv %s2531_s29  ;;  %v1171_v41 = vld [vmem:[%s1956_s14 + $0x40] sm:$0xff] (%p2955_p5) }
  0x95   : > { %1631 = vst [vmem:[%s1956_s14 + $0x360] sm:$0xff] %v801_v25  ;;  %1632 = vst [vmem:[%s1956_s14 + $0x368] sm:$0xff] %v802_v36  ;;  %v813_v22 = vsel %vm789_vm8, %v804_v33, %v778_v24  ;;  %v814_v21 = vsel %vm790_vm9, %v804_v33, %v778_v24  ;;  %v817_v43 = vsel %vm781_vm0, %v816_v13, %v780_v15  ;;  %v1173_v28 = vld [vmem:[%s1956_s14 + $0x48] sm:$0xff] (%p2955_p5)  ;;  %v1175_v42 = vld [vmem:[%s1956_s14 + $0x50] sm:$0xff] (%p2955_p5) }
  0x96   : > { %1633 = vst [vmem:[%s1956_s14 + $0x370] sm:$0xff] %v805_v40  ;;  %1634 = vst [vmem:[%s1956_s14 + $0x378] sm:$0xff] %v806_v2  ;;  %v818_v61 = vsel %vm782_vm1, %v816_v13, %v780_v15  ;;  %v819_v5 = vsel %vm783_vm2, %v816_v13, %v780_v15  ;;  %v820_v60 = vsel %vm784_vm3, %v816_v13, %v780_v15  ;;  %v1177_v50 = vld [vmem:[%s1956_s14 + $0x58] sm:$0xff] (%p2955_p5)  ;;  %v1179_v56 = vld [vmem:[%s1956_s14 + $0x60] sm:$0xff] (%p2955_p5) }
  0x97   : > { %1635 = vst [vmem:[%s1956_s14 + $0x380] sm:$0xff] %v807_v12  ;;  %1636 = vst [vmem:[%s1956_s14 + $0x388] sm:$0xff] %v808_v8  ;;  %v821_v54 = vsel %vm785_vm4, %v816_v13, %v780_v15  ;;  %v822_v0 = vsel %vm786_vm5, %v816_v13, %v780_v15  ;;  %v823_v62 = vsel %vm787_vm6, %v816_v13, %v780_v15  ;;  %v1181_v57 = vld [vmem:[%s1956_s14 + $0x68] sm:$0xff] (%p2955_p5)  ;;  %v1183_v47 = vld [vmem:[%s1956_s14 + $0x70] sm:$0xff] (%p2955_p5) }
  0x98   : > { %1637 = vst [vmem:[%s1956_s14 + $0x390] sm:$0xff] %v809_v11  ;;  %1638 = vst [vmem:[%s1956_s14 + $0x398] sm:$0xff] %v810_v26  ;;  %v824_v27 = vsel %vm788_vm7, %v816_v13, %v780_v15  ;;  %v825_v48 = vsel %vm789_vm8, %v816_v13, %v780_v15  ;;  %v826_v20 = vsel %vm790_vm9, %v816_v13, %v780_v15  ;;  %v1185_v3 = vld [vmem:[%s1956_s14 + $0x78] sm:$0xff] (%p2955_p5)  ;;  %v1187_v4 = vld [vmem:[%s1956_s14 + $0x80] sm:$0xff] (%p2955_p5) }
  0x99   : > { %1639 = vst [vmem:[%s1956_s14 + $0x3a0] sm:$0xff] %v811_v45  ;;  %1640 = vst [vmem:[%s1956_s14 + $0x3a8] sm:$0xff] %v812_v55  ;;  %866 = sbr.rel (!%p2955_p5) target bundleno = 225 (0xe1), region = 78  ;;  %v1189_v38 = vld [vmem:[%s1956_s14 + $0x88] sm:$0xff] (%p2955_p5)  ;;  %v1191_v9 = vld [vmem:[%s1956_s14 + $0x90] sm:$0xff] (%p2955_p5) }
  0x9a   : > { %1641 = vst [vmem:[%s1956_s14 + $0x3b0] sm:$0xff] %v813_v22  ;;  %1642 = vst [vmem:[%s1956_s14 + $0x3b8] sm:$0xff] %v814_v21  ;;  %v1193_v31 = vld [vmem:[%s1956_s14 + $0x98] sm:$0xff] (%p2955_p5)  ;;  %v1195_v17 = vld [vmem:[%s1956_s14 + $0xa0] sm:$0xff] (%p2955_p5) }
  0x9b   : > { %1643 = vst [vmem:[%s1956_s14 + $0x3c0] sm:$0xff] %v817_v43  ;;  %1644 = vst [vmem:[%s1956_s14 + $0x3c8] sm:$0xff] %v818_v61  ;;  %v1197_v59 = vld [vmem:[%s1956_s14 + $0xa8] sm:$0xff] (%p2955_p5)  ;;  %v1199_v53 = vld [vmem:[%s1956_s14 + $0xb0] sm:$0xff] (%p2955_p5) }
  0x9c   : > { %1645 = vst [vmem:[%s1956_s14 + $0x3d0] sm:$0xff] %v819_v5  ;;  %1646 = vst [vmem:[%s1956_s14 + $0x3d8] sm:$0xff] %v820_v60  ;;  %v1201_v18 = vld [vmem:[%s1956_s14 + $0xb8] sm:$0xff] (%p2955_p5)  ;;  %v1203_v63 = vld [vmem:[%s1956_s14 + $0xc0] sm:$0xff] (%p2955_p5) }
  0x9d   : > { %1647 = vst [vmem:[%s1956_s14 + $0x3e0] sm:$0xff] %v821_v54  ;;  %1648 = vst [vmem:[%s1956_s14 + $0x3e8] sm:$0xff] %v822_v0  ;;  %v1205_v51 = vld [vmem:[%s1956_s14 + $0xc8] sm:$0xff] (%p2955_p5)  ;;  %v1207_v49 = vld [vmem:[%s1956_s14 + $0xd0] sm:$0xff] (%p2955_p5) }
  0x9e   : > { %1649 = vst [vmem:[%s1956_s14 + $0x3f0] sm:$0xff] %v823_v62  ;;  %1650 = vst [vmem:[%s1956_s14 + $0x3f8] sm:$0xff] %v824_v27  ;;  %v1209_v16 = vld [vmem:[%s1956_s14 + $0xd8] sm:$0xff] (%p2955_p5)  ;;  %v1213_v29 = vld [vmem:[%s1956_s14 + $0xe8] sm:$0xff] (%p2955_p5) }
  0x9f   : > { %1651 = vst [vmem:[%s1956_s14 + $0x400] sm:$0xff] %v825_v48  ;;  %1652 = vst [vmem:[%s1956_s14 + $0x408] sm:$0xff] %v826_v20  ;;  %v1215_v32 = vld [vmem:[%s1956_s14 + $0xf0] sm:$0xff] (%p2955_p5)  ;;  %v1217_v46 = vld [vmem:[%s1956_s14 + $0xf8] sm:$0xff] (%p2955_p5) }
  0xa0   : > { %1156 = vst [vmem:[%s2681_s5] sm:$0xff] %v1155_v58  ;;  %1158 = vst [vmem:[%s2681_s5 + $0x8] sm:$0xff] %v1157_v52  ;;  %v1219_v37 = vld [vmem:[%s1956_s14 + $0x100] sm:$0xff]  ;;  %v1221_v35 = vld [vmem:[%s1956_s14 + $0x108] sm:$0xff] }
  0xa1   : > { %1160 = vst [vmem:[%s2681_s5 + $0x10] sm:$0xff] %v1159_v19  ;;  %1162 = vst [vmem:[%s2681_s5 + $0x18] sm:$0xff] %v1161_v10  ;;  %v1223_v6 = vld [vmem:[%s1956_s14 + $0x110] sm:$0xff]  ;;  %v1225_v1 = vld [vmem:[%s1956_s14 + $0x118] sm:$0xff] }
  0xa2   : > { %1164 = vst [vmem:[%s2681_s5 + $0x20] sm:$0xff] %v1163_v34  ;;  %1166 = vst [vmem:[%s2681_s5 + $0x28] sm:$0xff] %v1165_v30  ;;  %v1227_v23 = vld [vmem:[%s1956_s14 + $0x120] sm:$0xff]  ;;  %v1229_v24 = vld [vmem:[%s1956_s14 + $0x128] sm:$0xff] }
  0xa3   : > { %1168 = vst [vmem:[%s2681_s5 + $0x30] sm:$0xff] %v1167_v14  ;;  %1170 = vst [vmem:[%s2681_s5 + $0x38] sm:$0xff] %v1169_v7  ;;  %v1231_v44 = vld [vmem:[%s1956_s14 + $0x130] sm:$0xff]  ;;  %v1233_v25 = vld [vmem:[%s1956_s14 + $0x138] sm:$0xff] }
  0xa4   : > { %1172 = vst [vmem:[%s2681_s5 + $0x40] sm:$0xff] %v1171_v41  ;;  %1174 = vst [vmem:[%s2681_s5 + $0x48] sm:$0xff] %v1173_v28  ;;  %v1235_v36 = vld [vmem:[%s1956_s14 + $0x140] sm:$0xff]  ;;  %v1237_v33 = vld [vmem:[%s1956_s14 + $0x148] sm:$0xff] }
  0xa5   : > { %1176 = vst [vmem:[%s2681_s5 + $0xa0] sm:$0xff] %v1175_v42  ;;  %1178 = vst [vmem:[%s2681_s5 + $0xa8] sm:$0xff] %v1177_v50  ;;  %v1239_v40 = vld [vmem:[%s1956_s14 + $0x150] sm:$0xff]  ;;  %v1241_v2 = vld [vmem:[%s1956_s14 + $0x158] sm:$0xff] }
  0xa6   : > { %1180 = vst [vmem:[%s2681_s5 + $0xb0] sm:$0xff] %v1179_v56  ;;  %1182 = vst [vmem:[%s2681_s5 + $0xb8] sm:$0xff] %v1181_v57  ;;  %v1243_v12 = vld [vmem:[%s1956_s14 + $0x160] sm:$0xff]  ;;  %v1245_v8 = vld [vmem:[%s1956_s14 + $0x168] sm:$0xff] }
  0xa7   : > { %1184 = vst [vmem:[%s2681_s5 + $0xc0] sm:$0xff] %v1183_v47  ;;  %1186 = vst [vmem:[%s2681_s5 + $0xc8] sm:$0xff] %v1185_v3  ;;  %v1247_v11 = vld [vmem:[%s1956_s14 + $0x170] sm:$0xff]  ;;  %v1249_v26 = vld [vmem:[%s1956_s14 + $0x178] sm:$0xff] }
  0xa8   : > { %1188 = vst [vmem:[%s2681_s5 + $0xd0] sm:$0xff] %v1187_v4  ;;  %1190 = vst [vmem:[%s2681_s5 + $0xd8] sm:$0xff] %v1189_v38  ;;  %v1251_v45 = vld [vmem:[%s1956_s14 + $0x180] sm:$0xff]  ;;  %v1253_v55 = vld [vmem:[%s1956_s14 + $0x188] sm:$0xff] }
  0xa9   : > { %1192 = vst [vmem:[%s2681_s5 + $0xe0] sm:$0xff] %v1191_v9  ;;  %1194 = vst [vmem:[%s2681_s5 + $0xe8] sm:$0xff] %v1193_v31  ;;  %v1255_v22 = vld [vmem:[%s1956_s14 + $0x190] sm:$0xff]  ;;  %v1257_v21 = vld [vmem:[%s1956_s14 + $0x198] sm:$0xff] }
  0xaa   : > { %1196 = vst [vmem:[%s2681_s5 + $0x140] sm:$0xff] %v1195_v17  ;;  %1198 = vst [vmem:[%s2681_s5 + $0x148] sm:$0xff] %v1197_v59  ;;  %v1259_v15 = vld [vmem:[%s1956_s14 + $0x1a0] sm:$0xff]  ;;  %v1261_v13 = vld [vmem:[%s1956_s14 + $0x1a8] sm:$0xff] }
  0xab   : > { %1200 = vst [vmem:[%s2681_s5 + $0x150] sm:$0xff] %v1199_v53  ;;  %1202 = vst [vmem:[%s2681_s5 + $0x158] sm:$0xff] %v1201_v18  ;;  %v1263_v43 = vld [vmem:[%s1956_s14 + $0x1b0] sm:$0xff]  ;;  %v1265_v61 = vld [vmem:[%s1956_s14 + $0x1b8] sm:$0xff] }
  0xac   : > { %1204 = vst [vmem:[%s2681_s5 + $0x160] sm:$0xff] %v1203_v63  ;;  %1206 = vst [vmem:[%s2681_s5 + $0x168] sm:$0xff] %v1205_v51  ;;  %v1267_v5 = vld [vmem:[%s1956_s14 + $0x1c0] sm:$0xff]  ;;  %v1269_v60 = vld [vmem:[%s1956_s14 + $0x1c8] sm:$0xff] }
  0xad   : > { %1208 = vst [vmem:[%s2681_s5 + $0x170] sm:$0xff] %v1207_v49  ;;  %1210 = vst [vmem:[%s2681_s5 + $0x178] sm:$0xff] %v1209_v16  ;;  %v1271_v54 = vld [vmem:[%s1956_s14 + $0x1d0] sm:$0xff]  ;;  %v1273_v0 = vld [vmem:[%s1956_s14 + $0x1d8] sm:$0xff] }
  0xae   : > { %1212 = vst [vmem:[%s2681_s5 + $0x180] sm:$0xff] %v1211_v39  ;;  %1214 = vst [vmem:[%s2681_s5 + $0x188] sm:$0xff] %v1213_v29  ;;  %v1275_v62 = vld [vmem:[%s1956_s14 + $0x1e0] sm:$0xff]  ;;  %v1277_v27 = vld [vmem:[%s1956_s14 + $0x1e8] sm:$0xff] }
  0xaf   : > { %1216 = vst [vmem:[%s2681_s5 + $0x1e0] sm:$0xff] %v1215_v32  ;;  %1218 = vst [vmem:[%s2681_s5 + $0x1e8] sm:$0xff] %v1217_v46  ;;  %v1279_v48 = vld [vmem:[%s1956_s14 + $0x1f0] sm:$0xff]  ;;  %v1281_v20 = vld [vmem:[%s1956_s14 + $0x1f8] sm:$0xff] }
  0xb0   : > { %1220 = vst [vmem:[%s2681_s5 + $0x1f0] sm:$0xff] %v1219_v37  ;;  %1222 = vst [vmem:[%s2681_s5 + $0x1f8] sm:$0xff] %v1221_v35  ;;  %v1283_v58 = vld [vmem:[%s1956_s14 + $0x200] sm:$0xff]  ;;  %v1285_v52 = vld [vmem:[%s1956_s14 + $0x208] sm:$0xff] }
  0xb1   : > { %1224 = vst [vmem:[%s2681_s5 + $0x200] sm:$0xff] %v1223_v6  ;;  %1226 = vst [vmem:[%s2681_s5 + $0x208] sm:$0xff] %v1225_v1  ;;  %v1287_v19 = vld [vmem:[%s1956_s14 + $0x210] sm:$0xff]  ;;  %v1289_v10 = vld [vmem:[%s1956_s14 + $0x218] sm:$0xff] }
  0xb2   : > { %1228 = vst [vmem:[%s2681_s5 + $0x210] sm:$0xff] %v1227_v23  ;;  %1230 = vst [vmem:[%s2681_s5 + $0x218] sm:$0xff] %v1229_v24  ;;  %v1291_v34 = vld [vmem:[%s1956_s14 + $0x220] sm:$0xff]  ;;  %v1293_v30 = vld [vmem:[%s1956_s14 + $0x228] sm:$0xff] }
  0xb3   : > { %1232 = vst [vmem:[%s2681_s5 + $0x220] sm:$0xff] %v1231_v44  ;;  %1234 = vst [vmem:[%s2681_s5 + $0x228] sm:$0xff] %v1233_v25  ;;  %v1295_v14 = vld [vmem:[%s1956_s14 + $0x230] sm:$0xff]  ;;  %v1297_v7 = vld [vmem:[%s1956_s14 + $0x238] sm:$0xff] }
  0xb4   : > { %1236 = vst [vmem:[%s2681_s5 + $0x280] sm:$0xff] %v1235_v36  ;;  %1238 = vst [vmem:[%s2681_s5 + $0x288] sm:$0xff] %v1237_v33  ;;  %v1299_v41 = vld [vmem:[%s1956_s14 + $0x240] sm:$0xff]  ;;  %v1301_v28 = vld [vmem:[%s1956_s14 + $0x248] sm:$0xff] }
  0xb5   : > { %1240 = vst [vmem:[%s2681_s5 + $0x290] sm:$0xff] %v1239_v40  ;;  %1242 = vst [vmem:[%s2681_s5 + $0x298] sm:$0xff] %v1241_v2  ;;  %v1303_v42 = vld [vmem:[%s1956_s14 + $0x250] sm:$0xff]  ;;  %v1305_v50 = vld [vmem:[%s1956_s14 + $0x258] sm:$0xff] }
  0xb6   : > { %1244 = vst [vmem:[%s2681_s5 + $0x2a0] sm:$0xff] %v1243_v12  ;;  %1246 = vst [vmem:[%s2681_s5 + $0x2a8] sm:$0xff] %v1245_v8  ;;  %v1307_v56 = vld [vmem:[%s1956_s14 + $0x260] sm:$0xff]  ;;  %v1309_v57 = vld [vmem:[%s1956_s14 + $0x268] sm:$0xff] }
  0xb7   : > { %1248 = vst [vmem:[%s2681_s5 + $0x2b0] sm:$0xff] %v1247_v11  ;;  %1250 = vst [vmem:[%s2681_s5 + $0x2b8] sm:$0xff] %v1249_v26  ;;  %v1311_v47 = vld [vmem:[%s1956_s14 + $0x270] sm:$0xff]  ;;  %v1313_v3 = vld [vmem:[%s1956_s14 + $0x278] sm:$0xff] }
  0xb8   : > { %1252 = vst [vmem:[%s2681_s5 + $0x2c0] sm:$0xff] %v1251_v45  ;;  %1254 = vst [vmem:[%s2681_s5 + $0x2c8] sm:$0xff] %v1253_v55  ;;  %v1315_v4 = vld [vmem:[%s1956_s14 + $0x280] sm:$0xff]  ;;  %v1317_v38 = vld [vmem:[%s1956_s14 + $0x288] sm:$0xff] }
  0xb9   : > { %1256 = vst [vmem:[%s2681_s5 + $0x320] sm:$0xff] %v1255_v22  ;;  %1258 = vst [vmem:[%s2681_s5 + $0x328] sm:$0xff] %v1257_v21  ;;  %v1319_v9 = vld [vmem:[%s1956_s14 + $0x290] sm:$0xff]  ;;  %v1321_v31 = vld [vmem:[%s1956_s14 + $0x298] sm:$0xff] }
  0xba   : > { %1260 = vst [vmem:[%s2681_s5 + $0x330] sm:$0xff] %v1259_v15  ;;  %1262 = vst [vmem:[%s2681_s5 + $0x338] sm:$0xff] %v1261_v13  ;;  %v1323_v17 = vld [vmem:[%s1956_s14 + $0x2a0] sm:$0xff]  ;;  %v1325_v59 = vld [vmem:[%s1956_s14 + $0x2a8] sm:$0xff] }
  0xbb   : > { %1264 = vst [vmem:[%s2681_s5 + $0x340] sm:$0xff] %v1263_v43  ;;  %1266 = vst [vmem:[%s2681_s5 + $0x348] sm:$0xff] %v1265_v61  ;;  %v1327_v53 = vld [vmem:[%s1956_s14 + $0x2b0] sm:$0xff]  ;;  %v1329_v18 = vld [vmem:[%s1956_s14 + $0x2b8] sm:$0xff] }
  0xbc   : > { %1268 = vst [vmem:[%s2681_s5 + $0x350] sm:$0xff] %v1267_v5  ;;  %1270 = vst [vmem:[%s2681_s5 + $0x358] sm:$0xff] %v1269_v60  ;;  %v1331_v63 = vld [vmem:[%s1956_s14 + $0x2c0] sm:$0xff]  ;;  %v1333_v51 = vld [vmem:[%s1956_s14 + $0x2c8] sm:$0xff] }
  0xbd   : > { %1272 = vst [vmem:[%s2681_s5 + $0x360] sm:$0xff] %v1271_v54  ;;  %1274 = vst [vmem:[%s2681_s5 + $0x368] sm:$0xff] %v1273_v0  ;;  %v1335_v49 = vld [vmem:[%s1956_s14 + $0x2d0] sm:$0xff]  ;;  %v1337_v16 = vld [vmem:[%s1956_s14 + $0x2d8] sm:$0xff] }
  0xbe   : > { %1276 = vst [vmem:[%s2681_s5 + $0x3c0] sm:$0xff] %v1275_v62  ;;  %1278 = vst [vmem:[%s2681_s5 + $0x3c8] sm:$0xff] %v1277_v27  ;;  %v1339_v39 = vld [vmem:[%s1956_s14 + $0x2e0] sm:$0xff]  ;;  %v1341_v29 = vld [vmem:[%s1956_s14 + $0x2e8] sm:$0xff] }
  0xbf   : > { %1280 = vst [vmem:[%s2681_s5 + $0x3d0] sm:$0xff] %v1279_v48  ;;  %1282 = vst [vmem:[%s2681_s5 + $0x3d8] sm:$0xff] %v1281_v20  ;;  %v1343_v32 = vld [vmem:[%s1956_s14 + $0x2f0] sm:$0xff]  ;;  %v1345_v46 = vld [vmem:[%s1956_s14 + $0x2f8] sm:$0xff] }
  0xc0   : > { %1284 = vst [vmem:[%s2681_s5 + $0x3e0] sm:$0xff] %v1283_v58  ;;  %1286 = vst [vmem:[%s2681_s5 + $0x3e8] sm:$0xff] %v1285_v52  ;;  %v1347_v37 = vld [vmem:[%s1956_s14 + $0x300] sm:$0xff]  ;;  %v1349_v35 = vld [vmem:[%s1956_s14 + $0x308] sm:$0xff] }
  0xc1   : > { %1288 = vst [vmem:[%s2681_s5 + $0x3f0] sm:$0xff] %v1287_v19  ;;  %1290 = vst [vmem:[%s2681_s5 + $0x3f8] sm:$0xff] %v1289_v10  ;;  %v1351_v6 = vld [vmem:[%s1956_s14 + $0x310] sm:$0xff]  ;;  %v1353_v1 = vld [vmem:[%s1956_s14 + $0x318] sm:$0xff] }
  0xc2   : > { %1292 = vst [vmem:[%s2681_s5 + $0x400] sm:$0xff] %v1291_v34  ;;  %1294 = vst [vmem:[%s2681_s5 + $0x408] sm:$0xff] %v1293_v30  ;;  %v1355_v23 = vld [vmem:[%s1956_s14 + $0x320] sm:$0xff]  ;;  %v1357_v24 = vld [vmem:[%s1956_s14 + $0x328] sm:$0xff] }
  0xc3   : > { %1296 = vst [vmem:[%s2681_s5 + $0x460] sm:$0xff] %v1295_v14  ;;  %1298 = vst [vmem:[%s2681_s5 + $0x468] sm:$0xff] %v1297_v7  ;;  %v1359_v44 = vld [vmem:[%s1956_s14 + $0x330] sm:$0xff]  ;;  %v1361_v25 = vld [vmem:[%s1956_s14 + $0x338] sm:$0xff] }
  0xc4   : > { %1300 = vst [vmem:[%s2681_s5 + $0x470] sm:$0xff] %v1299_v41  ;;  %1302 = vst [vmem:[%s2681_s5 + $0x478] sm:$0xff] %v1301_v28  ;;  %v1363_v36 = vld [vmem:[%s1956_s14 + $0x340] sm:$0xff]  ;;  %v1365_v33 = vld [vmem:[%s1956_s14 + $0x348] sm:$0xff] }
  0xc5   : > { %1304 = vst [vmem:[%s2681_s5 + $0x480] sm:$0xff] %v1303_v42  ;;  %1306 = vst [vmem:[%s2681_s5 + $0x488] sm:$0xff] %v1305_v50  ;;  %v1367_v40 = vld [vmem:[%s1956_s14 + $0x350] sm:$0xff]  ;;  %v1369_v2 = vld [vmem:[%s1956_s14 + $0x358] sm:$0xff] }
  0xc6   : > { %1308 = vst [vmem:[%s2681_s5 + $0x490] sm:$0xff] %v1307_v56  ;;  %1310 = vst [vmem:[%s2681_s5 + $0x498] sm:$0xff] %v1309_v57  ;;  %v1371_v12 = vld [vmem:[%s1956_s14 + $0x360] sm:$0xff]  ;;  %v1373_v8 = vld [vmem:[%s1956_s14 + $0x368] sm:$0xff] }
  0xc7   : > { %1312 = vst [vmem:[%s2681_s5 + $0x4a0] sm:$0xff] %v1311_v47  ;;  %1314 = vst [vmem:[%s2681_s5 + $0x4a8] sm:$0xff] %v1313_v3  ;;  %v1375_v11 = vld [vmem:[%s1956_s14 + $0x370] sm:$0xff]  ;;  %v1377_v26 = vld [vmem:[%s1956_s14 + $0x378] sm:$0xff] }
  0xc8   : > { %1316 = vst [vmem:[%s2681_s5 + $0x500] sm:$0xff] %v1315_v4  ;;  %1318 = vst [vmem:[%s2681_s5 + $0x508] sm:$0xff] %v1317_v38  ;;  %v1379_v45 = vld [vmem:[%s1956_s14 + $0x380] sm:$0xff]  ;;  %v1381_v55 = vld [vmem:[%s1956_s14 + $0x388] sm:$0xff] }
  0xc9   : > { %1320 = vst [vmem:[%s2681_s5 + $0x510] sm:$0xff] %v1319_v9  ;;  %1322 = vst [vmem:[%s2681_s5 + $0x518] sm:$0xff] %v1321_v31  ;;  %v1383_v22 = vld [vmem:[%s1956_s14 + $0x390] sm:$0xff]  ;;  %v1385_v21 = vld [vmem:[%s1956_s14 + $0x398] sm:$0xff] }
  0xca   : > { %1324 = vst [vmem:[%s2681_s5 + $0x520] sm:$0xff] %v1323_v17  ;;  %1326 = vst [vmem:[%s2681_s5 + $0x528] sm:$0xff] %v1325_v59  ;;  %v1387_v15 = vld [vmem:[%s1956_s14 + $0x3a0] sm:$0xff]  ;;  %v1389_v13 = vld [vmem:[%s1956_s14 + $0x3a8] sm:$0xff] }
  0xcb   : > { %1328 = vst [vmem:[%s2681_s5 + $0x530] sm:$0xff] %v1327_v53  ;;  %1330 = vst [vmem:[%s2681_s5 + $0x538] sm:$0xff] %v1329_v18  ;;  %v1391_v43 = vld [vmem:[%s1956_s14 + $0x3b0] sm:$0xff]  ;;  %v1393_v61 = vld [vmem:[%s1956_s14 + $0x3b8] sm:$0xff] }
  0xcc   : > { %1332 = vst [vmem:[%s2681_s5 + $0x540] sm:$0xff] %v1331_v63  ;;  %1334 = vst [vmem:[%s2681_s5 + $0x548] sm:$0xff] %v1333_v51  ;;  %v1395_v5 = vld [vmem:[%s1956_s14 + $0x3c0] sm:$0xff]  ;;  %v1397_v60 = vld [vmem:[%s1956_s14 + $0x3c8] sm:$0xff] }
  0xcd   : > { %1336 = vst [vmem:[%s2681_s5 + $0x5a0] sm:$0xff] %v1335_v49  ;;  %1338 = vst [vmem:[%s2681_s5 + $0x5a8] sm:$0xff] %v1337_v16  ;;  %v1399_v54 = vld [vmem:[%s1956_s14 + $0x3d0] sm:$0xff]  ;;  %v1401_v0 = vld [vmem:[%s1956_s14 + $0x3d8] sm:$0xff] }
  0xce   : > { %1340 = vst [vmem:[%s2681_s5 + $0x5b0] sm:$0xff] %v1339_v39  ;;  %1342 = vst [vmem:[%s2681_s5 + $0x5b8] sm:$0xff] %v1341_v29  ;;  %v1403_v62 = vld [vmem:[%s1956_s14 + $0x3e0] sm:$0xff]  ;;  %v1405_v27 = vld [vmem:[%s1956_s14 + $0x3e8] sm:$0xff] }
  0xcf   : > { %1344 = vst [vmem:[%s2681_s5 + $0x5c0] sm:$0xff] %v1343_v32  ;;  %1346 = vst [vmem:[%s2681_s5 + $0x5c8] sm:$0xff] %v1345_v46  ;;  %v1407_v48 = vld [vmem:[%s1956_s14 + $0x3f0] sm:$0xff]  ;;  %v1409_v20 = vld [vmem:[%s1956_s14 + $0x3f8] sm:$0xff] }
  0xd0   : > { %1348 = vst [vmem:[%s2681_s5 + $0x5d0] sm:$0xff] %v1347_v37  ;;  %1350 = vst [vmem:[%s2681_s5 + $0x5d8] sm:$0xff] %v1349_v35  ;;  %v1411_v58 = vld [vmem:[%s1956_s14 + $0x400] sm:$0xff]  ;;  %v1413_v52 = vld [vmem:[%s1956_s14 + $0x408] sm:$0xff] }
  0xd1   : > { %1352 = vst [vmem:[%s2681_s5 + $0x5e0] sm:$0xff] %v1351_v6  ;;  %1354 = vst [vmem:[%s2681_s5 + $0x5e8] sm:$0xff] %v1353_v1 }
  0xd2   : > { %1356 = vst [vmem:[%s2681_s5 + $0x640] sm:$0xff] %v1355_v23  ;;  %1358 = vst [vmem:[%s2681_s5 + $0x648] sm:$0xff] %v1357_v24 }
  0xd3   : > { %1360 = vst [vmem:[%s2681_s5 + $0x650] sm:$0xff] %v1359_v44  ;;  %1362 = vst [vmem:[%s2681_s5 + $0x658] sm:$0xff] %v1361_v25 }
  0xd4   : > { %1364 = vst [vmem:[%s2681_s5 + $0x660] sm:$0xff] %v1363_v36  ;;  %1366 = vst [vmem:[%s2681_s5 + $0x668] sm:$0xff] %v1365_v33 }
  0xd5   : > { %1368 = vst [vmem:[%s2681_s5 + $0x670] sm:$0xff] %v1367_v40  ;;  %1370 = vst [vmem:[%s2681_s5 + $0x678] sm:$0xff] %v1369_v2 }
  0xd6   : > { %1372 = vst [vmem:[%s2681_s5 + $0x680] sm:$0xff] %v1371_v12  ;;  %1374 = vst [vmem:[%s2681_s5 + $0x688] sm:$0xff] %v1373_v8 }
  0xd7   : > { %1376 = vst [vmem:[%s2681_s5 + $0x6e0] sm:$0xff] %v1375_v11  ;;  %1378 = vst [vmem:[%s2681_s5 + $0x6e8] sm:$0xff] %v1377_v26 }
  0xd8   : > { %1380 = vst [vmem:[%s2681_s5 + $0x6f0] sm:$0xff] %v1379_v45  ;;  %1382 = vst [vmem:[%s2681_s5 + $0x6f8] sm:$0xff] %v1381_v55 }
  0xd9   : > { %1384 = vst [vmem:[%s2681_s5 + $0x700] sm:$0xff] %v1383_v22  ;;  %1386 = vst [vmem:[%s2681_s5 + $0x708] sm:$0xff] %v1385_v21 }
  0xda   : > { %1388 = vst [vmem:[%s2681_s5 + $0x710] sm:$0xff] %v1387_v15  ;;  %1390 = vst [vmem:[%s2681_s5 + $0x718] sm:$0xff] %v1389_v13 }
  0xdb   : > { %1392 = vst [vmem:[%s2681_s5 + $0x720] sm:$0xff] %v1391_v43  ;;  %1394 = vst [vmem:[%s2681_s5 + $0x728] sm:$0xff] %v1393_v61 }
  0xdc   : > { %1396 = vst [vmem:[%s2681_s5 + $0x780] sm:$0xff] %v1395_v5  ;;  %1398 = vst [vmem:[%s2681_s5 + $0x788] sm:$0xff] %v1397_v60 }
  0xdd   : > { %1400 = vst [vmem:[%s2681_s5 + $0x790] sm:$0xff] %v1399_v54  ;;  %1402 = vst [vmem:[%s2681_s5 + $0x798] sm:$0xff] %v1401_v0 }
  0xde   : > { %1404 = vst [vmem:[%s2681_s5 + $0x7a0] sm:$0xff] %v1403_v62  ;;  %1406 = vst [vmem:[%s2681_s5 + $0x7a8] sm:$0xff] %v1405_v27 }
  0xdf   : > { %1408 = vst [vmem:[%s2681_s5 + $0x7b0] sm:$0xff] %v1407_v48  ;;  %1410 = vst [vmem:[%s2681_s5 + $0x7b8] sm:$0xff] %v1409_v20 }
  0xe0   : > { %1412 = vst [vmem:[%s2681_s5 + $0x7c0] sm:$0xff] %v1411_v58  ;;  %1414 = vst [vmem:[%s2681_s5 + $0x7c8] sm:$0xff] %v1413_v52 }
  0xe1 PF: > { %p11_p8 = scmp.ge.s32.totalorder %s1801_s16, 4   ;;  %s2956_s12 = smov %s1754_s13 }
  0xe2   : > { %s2957_s13 = smov %s1811_s19  ;;  %s2958_s14 = smov %s1801_s16 }
  0xe3   :  { %13 = sbr.rel (!%p11_p8) target bundleno = 2 (0x2), region = 165 }
  0xea   :  { %1430 = vsyncpa [#allocation3], 1 }
  0xeb   :  { %1432 = vsyncpa [#allocation3 + $0x1], 1 }

</bundles_post_ra>
